<compile_context>
chip_gen: v5e
topology: v5e:2x2
jax: 0.10.0
libtpu: 0.0.40
codegen_flags: <defaults>
</compile_context>

<pallas_src>
import functools

import jax
import jax.numpy as jnp
from jax import lax
from jax.experimental import pallas as pl
from jax.experimental.pallas import tpu as pltpu


def _round_up(x, m):
    return ((x + m - 1) // m) * m


# --------------------------------------------------------------------------
# Kernel body pieces
# --------------------------------------------------------------------------
def _bce_tile(x_ref, t_ref):
    """Numerically-stable BCEWithLogitsLoss(reduction='none') on one tile."""
    x = x_ref[...].astype(jnp.float32)
    t = t_ref[...].astype(jnp.float32)
    return jnp.maximum(x, 0.0) - x * t + jnp.log1p(jnp.exp(-jnp.abs(x)))


def _accumulate(l, acc_ref, i, *, total_batch, tb, mask_tail):
    """Add this tile's per-class partial sums into the (8, tc) accumulator."""

    @pl.when(i == 0)
    def _():
        acc_ref[...] = jnp.zeros_like(acc_ref)

    def partial_sum(v):
        # Summing aligned (8, tc) slabs is pure VPU work (no per-step
        # cross-sublane reduce).
        return jnp.sum(v.reshape(tb // 8, 8, v.shape[-1]), axis=0)

    if mask_tail:
        # Static: B % tb != 0.  Only the LAST batch block needs masking;
        # interior blocks accumulate unmasked (no iota/cmp/select per step).
        last = pl.num_programs(1) - 1

        @pl.when(i != last)
        def _():
            acc_ref[...] += partial_sum(l)

        @pl.when(i == last)
        def _():
            # (tb, 1) column iota broadcasts through the select: tc/128x
            # less iota/compare work than a full (tb, tc) iota.
            row = i * tb + lax.broadcasted_iota(jnp.int32, (tb, 1), 0)
            acc_ref[...] += partial_sum(jnp.where(row < total_batch, l, 0.0))
    else:
        acc_ref[...] += partial_sum(l)


def _finalize(mean_ref, acc_ref, i, *, total_batch):
    @pl.when(i == pl.num_programs(1) - 1)
    def _():
        mean_ref[...] = (
            jnp.sum(acc_ref[...], axis=0, keepdims=True)
            * (1.0 / float(total_batch))
        ).astype(mean_ref.dtype)


def _bce_mean_kernel(x_ref, t_ref, exp_ref, mean_ref, acc_ref, *,
                     total_batch, tb, mask_tail):
    i = pl.program_id(1)                       # batch (reduction) block index
    l = _bce_tile(x_ref, t_ref)
    exp_ref[...] = l.astype(exp_ref.dtype)
    _accumulate(l, acc_ref, i, total_batch=total_batch, tb=tb,
                mask_tail=mask_tail)
    _finalize(mean_ref, acc_ref, i, total_batch=total_batch)


def _bce_mean_only_kernel(x_ref, t_ref, mean_ref, acc_ref, *,
                          total_batch, tb, mask_tail):
    i = pl.program_id(1)
    l = _bce_tile(x_ref, t_ref)
    _accumulate(l, acc_ref, i, total_batch=total_batch, tb=tb,
                mask_tail=mask_tail)
    _finalize(mean_ref, acc_ref, i, total_batch=total_batch)


# --------------------------------------------------------------------------
# Tiling heuristics
# --------------------------------------------------------------------------
def _auto_class_tile(C):
    """Class tile: >= 2 near-equal 128-multiple blocks when possible."""
    if C <= 128:
        return C                               # full dim (single block)
    # >=2 blocks so both v7x TensorCores get work; near-equal blocks avoid
    # heavy lane padding for C slightly above 1024.
    n_blocks = max(2, pl.cdiv(C, 1024))
    tc = _round_up(pl.cdiv(C, n_blocks), 128)
    return min(tc, _round_up(C, 128))


def _auto_batch_tile(B, tc):
    """Batch tile sized from the chip's VMEM capacity."""
    try:
        vmem_bytes = pltpu.get_tpu_info().vmem_capacity_bytes
    except Exception:                          # off-TPU / API drift: be safe
        vmem_bytes = 64 << 20
    # ~0.5M f32 elems/block on 64 MiB/TC parts (v7x) -> ~12 MiB pipelined;
    # ~1.5M on 128 MiB parts (v5e/v6e) -> ~36 MiB pipelined, fewer grid steps.
    target_elems = (512 * 1024) if vmem_bytes <= (64 << 20) else (3 * 512 * 1024)
    return max(8, min(_round_up(B, 8), _round_up(target_elems // tc, 8)))


# --------------------------------------------------------------------------
# Public wrapper
# --------------------------------------------------------------------------
def bilevel_loss(outputs, targets, label_embs=None, *, tb=None, tc=None,
                 return_expanded=True, expanded_dtype=None):
    """Pallas implementation of BiLevelLoss.forward (default flags).

    Args:
      outputs: (B, C) float logits.
      targets: (B, C) float targets in [0, 1] (f32 or bf16).
      label_embs: unused in the default (no-geodesic) path.
      tb, tc: optional batch / class tile overrides.
      return_expanded: if False, skip the (B, C) expanded_loss writeback.
      expanded_dtype: dtype of expanded_loss (default: outputs.dtype).
    Returns:
      (loss, expanded_loss) if return_expanded else loss; loss has shape (C,)
      matching `torch.mean(expanded_loss, 0)` semantics.
    """
    del label_embs  # not used when use_geodesic=False and only_label=False
    B, C = outputs.shape
    assert targets.shape == (B, C)

    loss_dtype = outputs.dtype
    if expanded_dtype is None:
        expanded_dtype = outputs.dtype

    # Lane (class) tile: a multiple of 128, or the full C dimension.
    if tc is None:
        tc = _auto_class_tile(C)
    assert tc == C or tc % 128 == 0, "tc must be a multiple of 128 or equal C"

    # Sublane (batch) tile: multiple of 8.
    if tb is None:
        tb = _auto_batch_tile(B, tc)
    tb = _round_up(tb, 8)

    grid_c = pl.cdiv(C, tc)
    grid_b = pl.cdiv(B, tb)
    mask_tail = (B % tb) != 0                   # static: tail masking needed?

    # HBM traffic estimate from the actual dtypes.
    bytes_accessed = B * C * (jnp.dtype(outputs.dtype).itemsize
                              + jnp.dtype(targets.dtype).itemsize)
    if return_expanded:
        bytes_accessed += B * C * jnp.dtype(expanded_dtype).itemsize
    bytes_accessed += C * jnp.dtype(loss_dtype).itemsize
    cost = pl.CostEstimate(flops=5 * B * C, transcendentals=2 * B * C,
                           bytes_accessed=bytes_accessed)

    compiler_params = pltpu.CompilerParams(
        dimension_semantics=("parallel", "arbitrary"),
        vmem_limit_bytes=48 << 20,              # never the full 64 MiB of v7x
    )

    in_specs = [
        pl.BlockSpec((tb, tc), lambda j, i: (i, j)),
        pl.BlockSpec((tb, tc), lambda j, i: (i, j)),
    ]
    mean_spec = pl.BlockSpec((1, tc), lambda j, i: (0, j))  # resident per C blk
    scratch = [pltpu.VMEM((8, tc), jnp.float32)]

    if return_expanded:
        kernel = functools.partial(_bce_mean_kernel, total_batch=B, tb=tb,
                                   mask_tail=mask_tail)
        expanded_loss, loss = pl.pallas_call(
            kernel,
            out_shape=(
                jax.ShapeDtypeStruct((B, C), expanded_dtype),  # expanded_loss
                jax.ShapeDtypeStruct((1, C), loss_dtype),      # batch mean
            ),
            grid_spec=pltpu.PrefetchScalarGridSpec(
                num_scalar_prefetch=0,
                grid=(grid_c, grid_b),          # C parallel, B (reduce) last
                in_specs=in_specs,
                out_specs=[
                    pl.BlockSpec((tb, tc), lambda j, i: (i, j)),
                    mean_spec,
                ],
                scratch_shapes=scratch,
            ),
            compiler_params=compiler_params,
            cost_estimate=cost,
        )(outputs, targets)
        return loss[0], expanded_loss

    kernel = functools.partial(_bce_mean_only_kernel, total_batch=B, tb=tb,
                               mask_tail=mask_tail)
    loss = pl.pallas_call(
        kernel,
        out_shape=jax.ShapeDtypeStruct((1, C), loss_dtype),
        grid_spec=pltpu.PrefetchScalarGridSpec(
            num_scalar_prefetch=0,
            grid=(grid_c, grid_b),
            in_specs=in_specs,
            out_specs=mean_spec,
            scratch_shapes=scratch,
        ),
        compiler_params=compiler_params,
        cost_estimate=cost,
    )(outputs, targets)
    return loss[0]


# --------------------------------------------------------------------------
# Pure-JAX reference + tests
# --------------------------------------------------------------------------
def _reference(outputs, targets):
    x = outputs.astype(jnp.float32)
    t = targets.astype(jnp.float32)
    l = jnp.maximum(x, 0.0) - x * t + jnp.log1p(jnp.exp(-jnp.abs(x)))
    return jnp.mean(l, axis=0), l


if __name__ == "__main__":
    key = jax.random.PRNGKey(0)
    k1, k2, k3 = jax.random.split(key, 3)

    # B deliberately NOT a multiple of the batch tile -> exercises tail mask;
    # C=384 -> auto tiling gives 2 class blocks (v7x dual-TC path).
    B, C = 200, 384
    outputs = jax.random.normal(k1, (B, C), dtype=jnp.float32)
    targets = (jax.random.uniform(k2, (B, C)) > 0.5).astype(jnp.float32)
    # label_embs only matters for the (untranslated) geodesic path; API parity.
    label_embs = jax.random.normal(k3, (4, 6, 8), dtype=jnp.float32)

    ref_loss, ref_expanded = _reference(outputs, targets)

    # 1) Default (auto) tiling: >=2 class blocks, single batch block + tail.
    loss, expanded = jax.block_until_ready(
        bilevel_loss(outputs, targets, label_embs))
    assert loss.shape == (C,) and expanded.shape == (B, C)
    assert jnp.allclose(loss, ref_loss, atol=1e-5, rtol=1e-5)
    assert jnp.allclose(expanded, ref_expanded, atol=1e-5, rtol=1e-5)

    # 2) Explicit small tiles: multi-block 2-D grid + ragged batch tail
    #    (masked last block) + cross-step accumulator path.
    loss2, expanded2 = jax.block_until_ready(
        bilevel_loss(outputs, targets, label_embs, tb=64, tc=128))
    assert jnp.allclose(loss2, ref_loss, atol=1e-5, rtol=1e-5)
    assert jnp.allclose(expanded2, ref_expanded, atol=1e-5, rtol=1e-5)

    # 3) Batch tile that divides B exactly: unmasked accumulate path.
    loss3, expanded3 = jax.block_until_ready(
        bilevel_loss(outputs, targets, label_embs, tb=40, tc=128))
    assert jnp.allclose(loss3, ref_loss, atol=1e-5, rtol=1e-5)
    assert jnp.allclose(expanded3, ref_expanded, atol=1e-5, rtol=1e-5)

    # 4) Mean-only variant (drops the (B, C) writeback entirely).
    loss4 = jax.block_until_ready(
        bilevel_loss(outputs, targets, label_embs, return_expanded=False))
    assert loss4.shape == (C,)
    assert jnp.allclose(loss4, ref_loss, atol=1e-5, rtol=1e-5)

    # 5) bf16 targets (0/1 exactly representable) -> 2 bytes/elem less HBM.
    loss5, expanded5 = jax.block_until_ready(
        bilevel_loss(outputs, targets.astype(jnp.bfloat16), label_embs))
    assert jnp.allclose(loss5, ref_loss, atol=1e-5, rtol=1e-5)
    assert jnp.allclose(expanded5, ref_expanded, atol=1e-5, rtol=1e-5)

    print("KERNEL_OK")
</pallas_src>

<mosaic_0001>
module attributes {stable_mosaic.version = 11 : i64} {
  func.func @_bce_mean_kernel(%arg0: i32, %arg1: i32, %arg2: memref<200x256xf32, #tpu.memory_space<vmem>>, %arg3: memref<200x256xf32, #tpu.memory_space<vmem>>, %arg4: memref<200x256xf32, #tpu.memory_space<vmem>>, %arg5: memref<1x256xf32, #tpu.memory_space<vmem>>, %arg6: memref<8x256xf32, #tpu.memory_space<vmem>>) attributes {dimension_semantics = [#tpu.dimension_semantics<parallel>, #tpu.dimension_semantics<arbitrary>], iteration_bounds = array<i64: 2, 1>, scalar_prefetch = 0 : i64, scratch_operands = 1 : i64, tpu.core_type = #tpu.core_type<tc>, window_params = [{transform_indices = @transform_0, window_bounds = array<i64: 200, 256>}, {transform_indices = @transform_1, window_bounds = array<i64: 200, 256>}, {transform_indices = @transform_2, window_bounds = array<i64: 200, 256>}, {transform_indices = @transform_3, window_bounds = array<i64: 1, 256>}]} {
    %c0 = arith.constant 0 : index
    %c0_0 = arith.constant 0 : index
    %0 = vector.load %arg2[%c0, %c0_0] : memref<200x256xf32, #tpu.memory_space<vmem>>, vector<200x256xf32>
    %c0_1 = arith.constant 0 : index
    %c0_2 = arith.constant 0 : index
    %1 = vector.load %arg3[%c0_1, %c0_2] : memref<200x256xf32, #tpu.memory_space<vmem>>, vector<200x256xf32>
    %cst = arith.constant 0.000000e+00 : f32
    %2 = vector.broadcast %cst : f32 to vector<200x256xf32>
    %3 = arith.maximumf %0, %2 : vector<200x256xf32>
    %4 = arith.mulf %0, %1 : vector<200x256xf32>
    %5 = arith.subf %3, %4 : vector<200x256xf32>
    %6 = math.absf %0 : vector<200x256xf32>
    %cst_3 = arith.constant 0.000000e+00 : f32
    %7 = vector.broadcast %cst_3 : f32 to vector<200x256xf32>
    %8 = arith.subf %7, %6 : vector<200x256xf32>
    %9 = math.exp %8 : vector<200x256xf32>
    %10 = math.log1p %9 : vector<200x256xf32>
    %11 = arith.addf %5, %10 : vector<200x256xf32>
    %c0_4 = arith.constant 0 : index
    %c0_5 = arith.constant 0 : index
    %12 = vector.load %arg4[%c0_4, %c0_5] : memref<200x256xf32, #tpu.memory_space<vmem>>, vector<200x256xf32>
    tpu.vector_store %arg4[%c0_4, %c0_5], %11 {strides = array<i32>} : memref<200x256xf32, #tpu.memory_space<vmem>>, vector<200x256xf32>,
    %c0_i32 = arith.constant 0 : i32
    %13 = arith.cmpi eq, %arg1, %c0_i32 : i32
    %14 = arith.extui %13 : i1 to i32
    %c0_i32_6 = arith.constant 0 : i32
    %15 = arith.cmpi ne, %14, %c0_i32_6 : i32
    scf.if %15 {
      %cst_14 = arith.constant 0.000000e+00 : f32
      %24 = vector.broadcast %cst_14 : f32 to vector<8x256xf32>
      %c0_15 = arith.constant 0 : index
      %c0_16 = arith.constant 0 : index
      %25 = vector.load %arg6[%c0_15, %c0_16] : memref<8x256xf32, #tpu.memory_space<vmem>>, vector<8x256xf32>
      tpu.vector_store %arg6[%c0_15, %c0_16], %24 {strides = array<i32>} : memref<8x256xf32, #tpu.memory_space<vmem>>, vector<8x256xf32>,
    } else {
    }
    %c0_7 = arith.constant 0 : index
    %c0_8 = arith.constant 0 : index
    %16 = vector.load %arg6[%c0_7, %c0_8] : memref<8x256xf32, #tpu.memory_space<vmem>>, vector<8x256xf32>
    %17 = vector.shape_cast %11 : vector<200x256xf32> to vector<25x8x256xf32>
    %cst_9 = arith.constant dense<0.000000e+00> : vector<8x256xf32>
    %18 = vector.multi_reduction <add>, %17, %cst_9 [0] : vector<25x8x256xf32> to vector<8x256xf32>
    %19 = arith.addf %16, %18 : vector<8x256xf32>
    %c0_10 = arith.constant 0 : index
    %c0_11 = arith.constant 0 : index
    %20 = vector.load %arg6[%c0_10, %c0_11] : memref<8x256xf32, #tpu.memory_space<vmem>>, vector<8x256xf32>
    tpu.vector_store %arg6[%c0_10, %c0_11], %19 {strides = array<i32>} : memref<8x256xf32, #tpu.memory_space<vmem>>, vector<8x256xf32>,
    %c0_i32_12 = arith.constant 0 : i32
    %21 = arith.cmpi eq, %arg1, %c0_i32_12 : i32
    %22 = arith.extui %21 : i1 to i32
    %c0_i32_13 = arith.constant 0 : i32
    %23 = arith.cmpi ne, %22, %c0_i32_13 : i32
    scf.if %23 {
      %c0_14 = arith.constant 0 : index
      %c0_15 = arith.constant 0 : index
      %24 = vector.load %arg6[%c0_14, %c0_15] : memref<8x256xf32, #tpu.memory_space<vmem>>, vector<8x256xf32>
      %cst_16 = arith.constant dense<0.000000e+00> : vector<256xf32>
      %25 = vector.multi_reduction <add>, %24, %cst_16 [0] : vector<8x256xf32> to vector<256xf32>
      %26 = vector.shape_cast %25 : vector<256xf32> to vector<1x256xf32>
      %cst_17 = arith.constant 5.000000e-03 : f32
      %27 = vector.broadcast %cst_17 : f32 to vector<1x256xf32>
      %28 = arith.mulf %26, %27 : vector<1x256xf32>
      %c0_18 = arith.constant 0 : index
      %c0_19 = arith.constant 0 : index
      %29 = vector.load %arg5[%c0_18, %c0_19] : memref<1x256xf32, #tpu.memory_space<vmem>>, vector<1x256xf32>
      tpu.vector_store %arg5[%c0_18, %c0_19], %28 {strides = array<i32>} : memref<1x256xf32, #tpu.memory_space<vmem>>, vector<1x256xf32>,
    } else {
    }
    return
  }
  func.func @transform_0(%arg0: i32, %arg1: i32) -> (i32, i32) {
    %c0_i32 = arith.constant 0 : i32
    return %arg1, %arg0 : i32, i32
  }
  func.func @transform_1(%arg0: i32, %arg1: i32) -> (i32, i32) {
    %c0_i32 = arith.constant 0 : i32
    return %arg1, %arg0 : i32, i32
  }
  func.func @transform_2(%arg0: i32, %arg1: i32) -> (i32, i32) {
    %c0_i32 = arith.constant 0 : i32
    return %arg1, %arg0 : i32, i32
  }
  func.func @transform_3(%arg0: i32, %arg1: i32) -> (i32, i32) {
    %c0_i32 = arith.constant 0 : i32
    %c0_i32_0 = arith.constant 0 : i32
    return %c0_i32, %arg0 : i32, i32
  }
}

</mosaic_0001>

<bundles_post_ra>
// kernel: tpu_custom_call.1
= control target key start
LH: loop header
LB: loop body
LE: loop exit
PB: predicated region body
PF: predicated region fallthrough
CT: control target
= control target key end

     0   :  { %9 = vsyncpa [#allocation4], 0  ;;  %s3175_s0 = inlined_call_operand.hbm [shape: f32[200,384], index: 0, kind: input, shape index: {}]   ;;  %s3176_s1 = inlined_call_operand.hbm [shape: f32[200,384], index: 1, kind: input, shape index: {}]   ;;  %s3177_s2 = inlined_call_operand.hbm [shape: f32[200,384], index: 2, kind: output, shape index: {0}]   ;;  %s3178_s3 = inlined_call_operand.hbm [shape: f32[1,384], index: 3, kind: output, shape index: {1}]  }
   0x1   :  { %11 = vsyncpa [#allocation4 + $0x1], 0 }
   0x2   :  { %12 = vsyncpa [#allocation7], 0 }
   0x3   :  { %14 = vsyncpa [#allocation7 + $0x1], 0 }
   0x4   :  { %15 = vsyncpa [#allocation5], 0 }
   0x5   :  { %17 = vsyncpa [#allocation5 + $0x1], 0 }
   0x6   :  { %18 = vsyncpa [#allocation10], 0 }
   0x7   :  { %20 = vsyncpa [#allocation10 + $0x1], 0  ;;  %s2144_s12 = smov 0   ;;  %s2146_s13 = smov 0  }
   0x8   :  { %s2148_s14 = smov 0   ;;  %s2150_s15 = smov 0  }
   0x9   :  { %s2152_s16 = smov 0   ;;  %s2154_s17 = smov 0  }
   0xa LB: > { %s1593_s18 = sadd.s32 4294967295, %s2112_s17   ;;  %s1594_s19 = sadd.s32 4294967294, %s2112_s17   ;;  %s2112_s17 = sphi %s2154_s17, %s26_s17   ;;  %s2108_s16 = sphi %s2152_s16, %s3292_s16   ;;  %s2104_s15 = sphi %s2150_s15, %s3291_s15   ;;  %s2100_s14 = sphi %s2148_s14, %s3290_s14   ;;  %s2096_s13 = sphi %s2146_s13, %s3289_s13   ;;  %s2092_s12 = sphi %s2144_s12, %s3288_s12  }
   0xb   : > { %s38_s20 = sadd.s32 1, %s2108_s16  ;;  %s47_s21 = sadd.s32 1, %s2100_s14 }
   0xc   : > { %p40_p0 = scmp.ge.s32.totalorder %s38_s20, 2  ;;  %p54_p1 = scmp.ne.s32.totalorder %s2100_s14, %s2096_s13 }
   0xd   : > { %p55_p2 = scmp.eq.s32.totalorder %s2112_s17, 0  ;;  %p60_p3 = scmp.ne.s32.totalorder %s2096_s13, %s2092_s12 }
   0xe   : > { %s3294_s20 = smov (%p40_p0, %s38_s20), 0  ;;  %p61_p5 = scmp.eq.s32.totalorder %s1593_s18, 0 }
   0xf   : > { %3181 = sst [smem:[#allocation15_spill]] %s3294_s20  ;;  %p2185_p4 = por %p55_p2, %p54_p1 }
  0x10   : > { %s43_s23 = ssub.s32 %s2108_s16, %s3294_s20  ;;  %p114_p6 = scmp.eq.s32.totalorder %s1593_s18, 1 }
  0x11   : > { %p45_p7 = scmp.eq.s32.totalorder %s43_s23, 0  ;;  %p2191_p8 = por %p61_p5, %p60_p3 }
  0x12   : > { %p2195_p9 = por %p114_p6, %p54_p1  ;;  %p120_p10 = scmp.eq.s32.totalorder %s1594_s19, 1 }
  0x13   : > { %s2200_s26 = scalar_select %p45_p7, %s2100_s14, %s47_s21  }
  0x14   : > { %p2202_p11 = por %p120_p10, %p60_p3  ;;  %p1596_p12 = scmp.ge.s32.totalorder %s2112_s17, 2 }
  0x15   : > { %3185 = sst [smem:[#allocation16_spill]] %s2200_s26 }
  0x16   : > { %162 = sbr.rel (%p1596_p12) target bundleno = 91 (0x5b), region = 16 }
  0x1b   : > { %165 = sbr.rel (!%p2185_p4) target bundleno = 59 (0x3b), region = 20  ;;  %s166_s28 = sand.u32 (%p2185_p4), 1, %s2100_s14  }
  0x1c   : > { %s1597_s29 = sshll.u32 (%p2185_p4), %s2108_s16, 1  ;;  %s1625_s30 = smul.u32 (%p2185_p4), 400, %s166_s28 }
  0x1d   : > { %s173_s4 = ssub.s32 (%p2185_p4), 3, %s1597_s29  ;;  %s2216_s8 = scalar_lea.sflag (%p2185_p4), [#allocation4], %s166_s28 }
  0x1e   : > { %p174_p13 = scmp.lt.s32.totalorder (%p2185_p4), %s173_s4, 2  ;;  %s170_s9 = scalar_lea.vmem (%p2185_p4), [#allocation3], %s1625_s30 }
  0x20   : > { %s3296_s4 = smov (!%p174_p13, %s173_s4), 2 }
  0x21   : > { %s176_s5 = smul.u32 200, %s3296_s4 }
  0x23   : > { %s177_s6 = ssub.s32 400, %s176_s5 }
  0x24   : > { %s178_s7 = sshll.u32 %s177_s6, 4 }
  0x25   : > { %179 = vsyncadd %s2216_s8, %s178_s7  ;;  %p2219_p0 = scmp.ne.s32.totalorder %s176_s5, 0  ;;  %s1622_s11 = sshll.u32 %s2108_s16, 4 }
  0x26   : > { %s184_s21 = scalar_lea.hbm %s3175_s0, %s1622_s11  ;;  %s1600_s23 = sshll.u32 %s3296_s4, 3 }
  0x27   : > { %s187_s29 = sshll.u32 %s184_s21, 4  ;;  %s189_s28 = sshll.u32 %s170_s9, 4  ;;  %s188_s29 = int_to_ptr.hbm [resolvable:$true] %s187_s29  ;;  %s190_s28 = int_to_ptr.vmem [resolvable:$true] %s189_s28 }
  0x28   : > { %s1602_s30 = smul.u32 3200, %s3296_s4  ;;  %s1913_s5 = sshra.s32 %s190_s28, 4  ;;  %s1914_s5 = int_to_ptr.vmem [resolvable:$true] %s1913_s5 }
  0x29   : > { %s2114_s11 = smov [#allocation3]  }
  0x2a   : > { %s1896_s6 = sshrl.u32 %s1602_s30, 4  ;;  %s1924_s18 = scalar_lea.vmem %s2114_s11, 800 }
  0x2b   : > { %s1932_s7 = sshll.u32 %s1896_s6, 4  ;;  %s1899_s20 = sadd.s32 1, %s1896_s6 }
  0x2c   : > { %p1898_p1 = scmp.ne.s32.totalorder %s1932_s7, %s1602_s30 }
  0x2e   : > { %s3298_s20 = smov (!%p1898_p1, %s1899_s20), %s1896_s6 }
  0x2f   : > { %s1920_s26 = scalar_lea.vmem %s1914_s5, %s3298_s20 }
  0x30   : > { %p1921_p2 = scmp.ne.s32.totalorder %s1914_s5, %s1920_s26  ;;  %p1926_p6 = scmp.lt.s32.totalorder %s1924_s18, %s1920_s26 }
  0x32   : > { %p1922_p3 = pnand %p1921_p2, %p2219_p0 }
  0x34   : > { %p1923_p5 = pneg %p1922_p3 }
  0x36   : > { %p1928_p7 = pnand %p1926_p6, %p1923_p5 }
  0x38   : > { %1931 = shalt.err (!%p1928_p7)
}
  0x39   : > { %s2115_s9 = smov 384   ;;  %s2116_s19 = smov 256  }
  0x3a   : > { %195 = dma.hbm_to_vmem [thread:$0]  (%p2219_p0), %s188_s29, %s1602_s30, %s190_s28, %s2216_s8, %s2115_s9, %s2116_s19, %s1600_s23  }
  0x3b PF: > { %198 = sbr.rel (!%p2185_p4) target bundleno = 91 (0x5b), region = 24  ;;  %s199_s20 = sand.u32 (%p2185_p4), 1, %s2100_s14  }
  0x3c   : > { %s1603_s21 = sshll.u32 (%p2185_p4), %s2108_s16, 1  ;;  %s1626_s6 = smul.u32 (%p2185_p4), 400, %s199_s20 }
  0x3d   : > { %s206_s26 = ssub.s32 (%p2185_p4), 3, %s1603_s21  ;;  %s2243_s10 = scalar_lea.sflag (%p2185_p4), [#allocation7], %s199_s20 }
  0x3e   : > { %p207_p10 = scmp.lt.s32.totalorder (%p2185_p4), %s206_s26, 2  ;;  %s203_s4 = scalar_lea.vmem (%p2185_p4), [#allocation6], %s1626_s6 }
  0x40   : > { %s3300_s26 = smov (!%p207_p10, %s206_s26), 2 }
  0x41   : > { %s209_s7 = smul.u32 200, %s3300_s26 }
  0x43   : > { %s210_s5 = ssub.s32 400, %s209_s7 }
  0x44   : > { %s211_s11 = sshll.u32 %s210_s5, 4 }
  0x45   : > { %212 = vsyncadd %s2243_s10, %s211_s11  ;;  %p2246_p4 = scmp.ne.s32.totalorder %s209_s7, 0  ;;  %s1623_s8 = sshll.u32 %s2108_s16, 4 }
  0x46   : > { %s217_s28 = scalar_lea.hbm %s3176_s1, %s1623_s8  ;;  %s1606_s30 = sshll.u32 %s3300_s26, 3 }
  0x47   : > { %s220_s18 = sshll.u32 %s217_s28, 4  ;;  %s222_s9 = sshll.u32 %s203_s4, 4  ;;  %s221_s18 = int_to_ptr.hbm [resolvable:$true] %s220_s18  ;;  %s223_s9 = int_to_ptr.vmem [resolvable:$true] %s222_s9 }
  0x48   : > { %s1608_s19 = smul.u32 3200, %s3300_s26  ;;  %s1952_s7 = sshra.s32 %s223_s9, 4  ;;  %s1953_s7 = int_to_ptr.vmem [resolvable:$true] %s1952_s7 }
  0x49   : > { %s2117_s11 = smov [#allocation6]  }
  0x4a   : > { %s1935_s20 = sshrl.u32 %s1608_s19, 4  ;;  %s1963_s8 = scalar_lea.vmem %s2117_s11, 800 }
  0x4b   : > { %s1971_s21 = sshll.u32 %s1935_s20, 4  ;;  %s1938_s6 = sadd.s32 1, %s1935_s20 }
  0x4c   : > { %p1937_p13 = scmp.ne.s32.totalorder %s1971_s21, %s1608_s19 }
  0x4e   : > { %s3302_s6 = smov (!%p1937_p13, %s1938_s6), %s1935_s20 }
  0x4f   : > { %s1959_s5 = scalar_lea.vmem %s1953_s7, %s3302_s6 }
  0x50   : > { %p1960_p0 = scmp.ne.s32.totalorder %s1953_s7, %s1959_s5  ;;  %p1965_p3 = scmp.lt.s32.totalorder %s1963_s8, %s1959_s5 }
  0x52   : > { %p1961_p1 = pnand %p1960_p0, %p2246_p4 }
  0x54   : > { %p1962_p2 = pneg %p1961_p1 }
  0x56   : > { %p1967_p5 = pnand %p1965_p3, %p1962_p2 }
  0x58   : > { %1970 = shalt.err (!%p1967_p5)
}
  0x59   : > { %s2118_s4 = smov 384   ;;  %s2119_s23 = smov 256  }
  0x5a   : > { %228 = dma.hbm_to_vmem [thread:$0]  (%p2246_p4), %s221_s18, %s1608_s19, %s223_s9, %s2243_s10, %s2118_s4, %s2119_s23, %s1606_s30  }
  0x5b PF: > { %p1609_p6 = scmp.ge.s32.totalorder %s2112_s17, 1  ;;  %p230_p7 = scmp.lt.s32.totalorder %s2112_s17, 3 }
  0x5d   : > { %p231_p10 = pnand %p1609_p6, %p230_p7 }
  0x5e   : > { %s2266_s29 = sand.u32 (!%p231_p10), 1, %s2096_s13  }
  0x5f   : > { %234 = sbr.rel (%p231_p10) target bundleno = 431 (0x1af), region = 28  ;;  %s237_s22 = scalar_lea.sflag (!%p231_p10), [#allocation4], %s2266_s29 }
  0x60   : > { %s2269_s28 = smul.u32 (!%p231_p10), 400, %s2266_s29 }
  0x62   : > { %s2273_s26 = scalar_lea.vmem (!%p231_p10), [#allocation3], %s2269_s28 }
  0x64   : > { %2075 = dma.done.wait (%p2191_p8), %s237_s22, 6400  }
  0x65   : > { %2077 = vsyncadd (%p2191_p8), %s237_s22, 4294960896  ;;  %s247_s10 = scalar_lea.sflag [#allocation7], %s2266_s29  ;;  %s2281_s30 = scalar_lea.vmem [#allocation6], %s2269_s28 }
  0x66   : > { %2079 = dma.done.wait (%p2191_p8), %s247_s10, 6400  }
  0x67   : > { %2081 = vsyncadd (%p2191_p8), %s247_s10, 4294960896  ;;  %v306_v0 = vld [vmem:[%s2273_s26] sm:$0xff]  ;;  %v307_v2 = vld [vmem:[%s2273_s26 + $0x8] sm:$0xff]  ;;  %s2353_s24 = scalar_lea.vmem [#allocation8], %s2269_s28  ;;  %s1610_s18 = sshll.u32 %s2266_s29, 1 }
  0x68   : > { %v356_v1 = vld [vmem:[%s2281_s30] sm:$0xff]  ;;  %v556_v3 = vand.u32 2147483647, %v306_v0  ;;  %v308_v4 = vld [vmem:[%s2273_s26 + $0x10] sm:$0xff]  ;;  %v357_v5 = vld [vmem:[%s2281_s30 + $0x8] sm:$0xff]  ;;  %v406_v9 = vmax.f32 %v306_v0, 0.0 }
  0x69   : > { %v557_v6 = vand.u32 2147483647, %v307_v2  ;;  %v358_v7 = vld [vmem:[%s2281_s30 + $0x10] sm:$0xff]  ;;  %v558_v8 = vand.u32 2147483647, %v308_v4  ;;  %v456_v10 = vmul.f32 %v356_v1, %v306_v0  ;;  %v309_v12 = vld [vmem:[%s2273_s26 + $0x18] sm:$0xff]  ;;  %v457_v20 = vmul.f32 %v357_v5, %v307_v2 }
  0x6a   : > { %v606_v11 = vsub.f32 0.0, %v556_v3  ;;  %v359_v13 = vld [vmem:[%s2281_s30 + $0x18] sm:$0xff]  ;;  %v407_v14 = vmax.f32 %v307_v2, 0.0  ;;  %v408_v16 = vmax.f32 %v308_v4, 0.0  ;;  %v310_v18 = vld [vmem:[%s2273_s26 + $0x20] sm:$0xff]  ;;  %v458_v21 = vmul.f32 %v358_v7, %v308_v4  ;;  %v361_v24 = vld [vmem:[%s2281_s30 + $0x28] sm:$0xff] }
  0x6b   : > { %v607_v15 = vsub.f32 0.0, %v557_v6  ;;  %v608_v17 = vsub.f32 0.0, %v558_v8  ;;  %v559_v22 = vand.u32 2147483647, %v309_v12  ;;  %v360_v23 = vld [vmem:[%s2281_s30 + $0x20] sm:$0xff]  ;;  %v409_v27 = vmax.f32 %v309_v12, 0.0 }
  0x6c   : > { %v656_v19 = vmul.f32 1.442695, %v606_v11  ;;  %v459_v28 = vmul.f32 %v359_v13, %v309_v12  ;;  %v311_v29 = vld [vmem:[%s2273_s26 + $0x28] sm:$0xff]  ;;  %v410_v31 = vmax.f32 %v310_v18, 0.0  ;;  %v560_v32 = vand.u32 2147483647, %v310_v18 }
  0x6d   : > { %v658_v25 = vmul.f32 1.442695, %v607_v15  ;;  %v660_v26 = vmul.f32 1.442695, %v608_v17  ;;  %v609_v30 = vsub.f32 0.0, %v559_v22  ;;  %v2300_v33 = vld [vmem:[%s2273_s26 + $0x30] sm:$0xff]  ;;  %v460_v34 = vmul.f32 %v360_v23, %v310_v18 }
  0x6e   : > { %1694 = vpow2.f32 %v656_v19  ;;  %v411_v35 = vmax.f32 %v311_v29, 0.0  ;;  %v461_v36 = vmul.f32 %v361_v24, %v311_v29  ;;  %v610_v38 = vsub.f32 0.0, %v560_v32  ;;  %v362_v44 = vld [vmem:[%s2281_s30 + $0x30] sm:$0xff]  ;;  %v2315_v49 = vld [vmem:[%s2273_s26 + $0x38] sm:$0xff]  ;;  %v2325_v63 = vld [vmem:[%s2273_s26 + $0x40] sm:$0xff]  ;;  %s3063_s9 = scalar_lea.vmem [#allocation9], %s1610_s18 }
  0x6f   : > { %1696 = vpow2.f32 %v658_v25  ;;  %v662_v37 = vmul.f32 1.442695, %v609_v30  ;;  %v561_v39 = vand.u32 2147483647, %v311_v29  ;;  %v562_v40 = vand.u32 2147483647, %v2300_v33 }
  0x70   : > { %1698 = vpow2.f32 %v660_v26  ;;  %v2303_v41 = vsub.f32 %v406_v9, %v456_v10  ;;  %v664_v42 = vmul.f32 1.442695, %v610_v38  ;;  %v2306_v45 = vsub.f32 %v407_v14, %v457_v20  ;;  %s3180_s19 = scalar_lea.sflag [#allocation5], %s2266_s29  ;;  %s1612_s21 = sshll.u32 (%p2195_p9), %s2104_s15, 1 }
  0x71   : > { %1700 = vpow2.f32 %v662_v37  ;;  %v611_v43 = vsub.f32 0.0, %v561_v39  ;;  %v2308_v46 = vsub.f32 %v408_v16, %v458_v21  ;;  %v2310_v47 = vsub.f32 %v409_v27, %v459_v28  ;;  %s1411_s6 = ssub.s32 (%p2195_p9), 3, %s1612_s21 }
  0x72   : > { %v2312_v48 = vsub.f32 %v410_v31, %v460_v34  ;;  %1702 = vpow2.f32 %v664_v42  ;;  %v2317_v51 = vsub.f32 %v411_v35, %v461_v36  ;;  %v412_v53 = vmax.f32 %v2300_v33, 0.0  ;;  %p1412_p8 = scmp.lt.s32.totalorder (%p2195_p9), %s1411_s6, 2 }
  0x73   : > { %v666_v52 = vmul.f32 1.442695, %v611_v43  ;;  %v2321_v57 = vmul.f32 %v362_v44, %v2300_v33  ;;  %v612_v58 = vsub.f32 0.0, %v562_v40  ;;  %v563_v62 = vand.u32 2147483647, %v2315_v49 }
  0x74   : > { %v1695_v50 = vpop.eup %1694  ;;  %v564_v9 = vand.u32 2147483647, %v2325_v63 }
  0x75   : > { %v1697_v54 = vpop.eup %1696  ;;  %v756_v55 = vadd.f32 1.0, %v1695_v50  ;;  %v759_v56 = vmul.f32 -0.5, %v1695_v50  ;;  %1704 = vpow2.f32 %v666_v52  ;;  %v762_v0 = vand.u32 2147483647, %v1695_v50 }
  0x76   : > { %v1699_v59 = vpop.eup %1698  ;;  %v765_v60 = vadd.f32 1.0, %v1697_v54  ;;  %v768_v61 = vmul.f32 -0.5, %v1697_v54  ;;  %v771_v1 = vand.u32 2147483647, %v1697_v54  ;;  %v668_v8 = vmul.f32 1.442695, %v612_v58 }
  0x77   : > { %1706 = vlog2.f32 %v756_v55  ;;  %v774_v2 = vadd.f32 1.0, %v1699_v59  ;;  %v1701_v3 = vpop.eup %1700  ;;  %v760_v4 = vadd.f32 1.0, %v759_v56  ;;  %v777_v6 = vmul.f32 -0.5, %v1699_v59 }
  0x78   : > { %1708 = vlog2.f32 %v765_v60  ;;  %v769_v5 = vadd.f32 1.0, %v768_v61  ;;  %v783_v7 = vadd.f32 1.0, %v1701_v3  ;;  %v1703_v10 = vpop.eup %1702  ;;  %v780_v12 = vand.u32 2147483647, %v1699_v59  ;;  %v315_v61 = vld [vmem:[%s2273_s26 + $0x48] sm:$0xff] }
  0x79   : > { %1710 = vlog2.f32 %v774_v2  ;;  %v778_v11 = vadd.f32 1.0, %v777_v6  ;;  %v786_v13 = vmul.f32 -0.5, %v1701_v3  ;;  %v789_v14 = vand.u32 2147483647, %v1701_v3  ;;  %v363_v6 = vld [vmem:[%s2281_s30 + $0x38] sm:$0xff] }
  0x7a   : > { %vm2328_vm0 = vcmp.lt.f32.partialorder %v762_v0, 0.0004427343  ;;  %1712 = vlog2.f32 %v783_v7  ;;  %v792_v16 = vadd.f32 1.0, %v1703_v10  ;;  %v795_v17 = vmul.f32 -0.5, %v1703_v10 }
  0x7b   : > { %v1705_v18 = vpop.eup %1704  ;;  %v761_v19 = vmul.f32 %v1695_v50, %v760_v4  ;;  %v770_v20 = vmul.f32 %v1697_v54, %v769_v5  ;;  %vm2332_vm1 = vcmp.lt.f32.partialorder %v771_v1, 0.0004427343  ;;  %v787_v22 = vadd.f32 1.0, %v786_v13 }
  0x7c   : > { %1714 = vlog2.f32 %v792_v16  ;;  %v796_v24 = vadd.f32 1.0, %v795_v17  ;;  %v801_v25 = vadd.f32 1.0, %v1705_v18  ;;  %v804_v26 = vmul.f32 -0.5, %v1705_v18  ;;  %v365_v16 = vld [vmem:[%s2281_s30 + $0x48] sm:$0xff] }
  0x7d   : > { %v1707_v23 = vpop.eup %1706  ;;  %v779_v29 = vmul.f32 %v1699_v59, %v778_v11  ;;  %vm2336_vm2 = vcmp.lt.f32.partialorder %v780_v12, 0.0004427343  ;;  %vm2340_vm3 = vcmp.lt.f32.partialorder %v789_v14, 0.0004427343  ;;  %v788_v35 = vmul.f32 %v1701_v3, %v787_v22  ;;  %v364_v11 = vld [vmem:[%s2281_s30 + $0x40] sm:$0xff] }
  0x7e   : > { %v1709_v27 = vpop.eup %1708  ;;  %v758_v28 = vmul.f32 0.6931472, %v1707_v23  ;;  %v798_v36 = vand.u32 2147483647, %v1703_v10  ;;  %1716 = vlog2.f32 %v801_v25  ;;  %v805_v39 = vadd.f32 1.0, %v804_v26  ;;  %v2388_v23 = vld [vmem:[%s2273_s26 + $0x58] sm:$0xff] }
  0x7f   : > { %v1711_v32 = vpop.eup %1710  ;;  %v767_v34 = vmul.f32 0.6931472, %v1709_v27  ;;  %1718 = vpow2.f32 %v668_v8  ;;  %v797_v44 = vmul.f32 %v1703_v10, %v796_v24  ;;  %v807_v50 = vand.u32 2147483647, %v1705_v18 }
  0x80   : > { %v764_v37 = vsel %vm2328_vm0, %v761_v19, %v758_v28  ;;  %v776_v38 = vmul.f32 0.6931472, %v1711_v32  ;;  %v1713_v40 = vpop.eup %1712  ;;  %v613_v56 = vsub.f32 0.0, %v563_v62  ;;  %vm2357_vm4 = vcmp.lt.f32.partialorder %v798_v36, 0.0004427343 }
  0x81   : > { %v1206_v42 = vadd.f32 %v764_v37, %v2303_v41  ;;  %v773_v43 = vsel %vm2332_vm1, %v770_v20, %v767_v34  ;;  %v785_v55 = vmul.f32 0.6931472, %v1713_v40  ;;  %v614_v60 = vsub.f32 0.0, %v564_v9  ;;  %v316_v20 = vld [vmem:[%s2273_s26 + $0x50] sm:$0xff] }
  0x82   : > { %v1207_v52 = vadd.f32 %v773_v43, %v2306_v45  ;;  %v782_v54 = vsel %vm2336_vm2, %v779_v29, %v776_v38  ;;  %v1715_v58 = vpop.eup %1714  ;;  %v413_v45 = vmax.f32 %v2315_v49, 0.0  ;;  %v806_v1 = vmul.f32 %v1705_v18, %v805_v39  ;;  %v366_v37 = vld [vmem:[%s2281_s30 + $0x50] sm:$0xff] }
  0x83   : > { %1256 = vst [vmem:[%s2353_s24] sm:$0xff] %v1206_v42  ;;  %v1208_v41 = vadd.f32 %v782_v54, %v2308_v46  ;;  %v791_v62 = vsel %vm2340_vm3, %v788_v35, %v785_v55  ;;  %v794_v0 = vmul.f32 0.6931472, %v1715_v58  ;;  %v670_v2 = vmul.f32 1.442695, %v613_v56  ;;  %v2410_v58 = vld [vmem:[%s2273_s26 + $0x60] sm:$0xff] }
  0x84   : > { %1257 = vst [vmem:[%s2353_s24 + $0x8] sm:$0xff] %v1207_v52  ;;  %v1717_v3 = vpop.eup %1716  ;;  %v1209_v4 = vadd.f32 %v791_v62, %v2310_v47  ;;  %vm2368_vm5 = vcmp.lt.f32.partialorder %v807_v50, 0.0004427343  ;;  %v672_v7 = vmul.f32 1.442695, %v614_v60  ;;  %v463_v18 = vmul.f32 %v363_v6, %v2315_v49  ;;  %v367_v50 = vld [vmem:[%s2281_s30 + $0x58] sm:$0xff] }
  0x85   : > { %1258 = vst [vmem:[%s2353_s24 + $0x10] sm:$0xff] %v1208_v41  ;;  %v1314_v46 = vadd.f32 %v1208_v41, %v1206_v42  ;;  %v1719_v8 = vpop.eup %1718  ;;  %v800_v9 = vsel %vm2357_vm4, %v797_v44, %v794_v0  ;;  %v803_v10 = vmul.f32 0.6931472, %v1717_v3  ;;  %1720 = vpow2.f32 %v670_v2  ;;  %v2413_v41 = vld [vmem:[%s2273_s26 + $0x68] sm:$0xff] }
  0x86   : > { %v565_v12 = vand.u32 2147483647, %v315_v61  ;;  %1259 = vst [vmem:[%s2353_s24 + $0x18] sm:$0xff] %v1209_v4  ;;  %v1338_v13 = vadd.f32 %v1209_v4, %v1207_v52  ;;  %v1210_v47 = vadd.f32 %v800_v9, %v2312_v48  ;;  %v810_v14 = vadd.f32 1.0, %v1719_v8 }
  0x87   : > { %v813_v15 = vmul.f32 -0.5, %v1719_v8  ;;  %v809_v17 = vsel %vm2368_vm5, %v806_v1, %v803_v10  ;;  %v414_v19 = vmax.f32 %v2325_v63, 0.0  ;;  %1722 = vpow2.f32 %v672_v7 }
  0x88   : > { %1260 = vst [vmem:[%s2353_s24 + $0x20] sm:$0xff] %v1210_v47  ;;  %v1315_v21 = vadd.f32 %v1314_v46, %v1210_v47  ;;  %v1211_v22 = vadd.f32 %v809_v17, %v2317_v51  ;;  %1724 = vlog2.f32 %v810_v14  ;;  %v464_v48 = vmul.f32 %v364_v11, %v2325_v63 }
  0x89   : > { %v814_v24 = vadd.f32 1.0, %v813_v15  ;;  %v415_v25 = vmax.f32 %v315_v61, 0.0  ;;  %v465_v26 = vmul.f32 %v365_v16, %v315_v61  ;;  %v615_v27 = vsub.f32 0.0, %v565_v12 }
  0x8a   : > { %1261 = vst [vmem:[%s2353_s24 + $0x28] sm:$0xff] %v1211_v22  ;;  %v2391_v49 = vadd.f32 %v1338_v13, %v1211_v22  ;;  %v816_v28 = vand.u32 2147483647, %v1719_v8  ;;  %v566_v29 = vand.u32 2147483647, %v316_v20  ;;  %v512_v51 = vsub.f32 %v412_v53, %v2321_v57  ;;  %v368_v13 = vld [vmem:[%s2281_s30 + $0x60] sm:$0xff] }
  0x8b   : > { %v1721_v30 = vpop.eup %1720  ;;  %v2396_v31 = vsub.f32 %v413_v45, %v463_v18  ;;  %v674_v63 = vmul.f32 1.442695, %v615_v27  ;;  %v567_v32 = vand.u32 2147483647, %v2388_v23  ;;  %v2399_v36 = vsub.f32 %v414_v19, %v464_v48 }
  0x8c   : > { %v819_v34 = vadd.f32 1.0, %v1721_v30  ;;  %v822_v35 = vmul.f32 -0.5, %v1721_v30  ;;  %v616_v38 = vsub.f32 0.0, %v566_v29  ;;  %v815_v40 = vmul.f32 %v1719_v8, %v814_v24 }
  0x8d   : > { %v1723_v39 = vpop.eup %1722  ;;  %v2402_v42 = vsub.f32 %v415_v25, %v465_v26  ;;  %1726 = vpow2.f32 %v674_v63  ;;  %v617_v33 = vsub.f32 0.0, %v567_v32  ;;  %vm2404_vm6 = vcmp.lt.f32.partialorder %v816_v28, 0.0004427343  ;;  %v369_v25 = vld [vmem:[%s2281_s30 + $0x68] sm:$0xff] }
  0x8e   : > { %v1725_v53 = vpop.eup %1724  ;;  %1728 = vlog2.f32 %v819_v34  ;;  %v828_v43 = vadd.f32 1.0, %v1723_v39  ;;  %v416_v44 = vmax.f32 %v316_v20, 0.0  ;;  %v823_v54 = vadd.f32 1.0, %v822_v35 }
  0x8f   : > { %v812_v52 = vmul.f32 0.6931472, %v1725_v53  ;;  %v831_v55 = vmul.f32 -0.5, %v1723_v39  ;;  %v466_v56 = vmul.f32 %v366_v37, %v316_v20  ;;  %v825_v59 = vand.u32 2147483647, %v1721_v30 }
  0x90   : > { %1730 = vlog2.f32 %v828_v43  ;;  %v676_v45 = vmul.f32 1.442695, %v616_v38  ;;  %v678_v60 = vmul.f32 1.442695, %v617_v33  ;;  %v417_v0 = vmax.f32 %v2388_v23, 0.0 }
  0x91   : > { %v818_v61 = vsel %vm2404_vm6, %v815_v40, %v812_v52  ;;  %v832_v62 = vadd.f32 1.0, %v831_v55  ;;  %v467_v1 = vmul.f32 %v367_v50, %v2388_v23  ;;  %v834_v3 = vand.u32 2147483647, %v1723_v39 }
  0x92   : > { %v1212_v2 = vadd.f32 %v818_v61, %v512_v51  ;;  %1732 = vpow2.f32 %v676_v45  ;;  %v568_v46 = vand.u32 2147483647, %v2410_v58  ;;  %v824_v5 = vmul.f32 %v1721_v30, %v823_v54 }
  0x93   : > { %v1727_v4 = vpop.eup %1726  ;;  %v2420_v6 = vsub.f32 %v416_v44, %v466_v56  ;;  %1734 = vpow2.f32 %v678_v60  ;;  %v569_v7 = vand.u32 2147483647, %v2413_v41  ;;  %vm2424_vm7 = vcmp.lt.f32.partialorder %v825_v59, 0.0004427343  ;;  %v2462_v56 = vld [vmem:[%s2273_s26 + $0x80] sm:$0xff] }
  0x94   : > { %v1729_v8 = vpop.eup %1728  ;;  %1262 = vst [vmem:[%s2353_s24 + $0x30] sm:$0xff] %v1212_v2  ;;  %v1316_v9 = vadd.f32 %v1315_v21, %v1212_v2  ;;  %v837_v11 = vadd.f32 1.0, %v1727_v4  ;;  %v840_v12 = vmul.f32 -0.5, %v1727_v4  ;;  %v833_v14 = vmul.f32 %v1723_v39, %v832_v62  ;;  %v2437_v21 = vld [vmem:[%s2273_s26 + $0x70] sm:$0xff] }
  0x95   : > { %v821_v47 = vmul.f32 0.6931472, %v1729_v8  ;;  %v618_v15 = vsub.f32 0.0, %v568_v46  ;;  %v619_v16 = vsub.f32 0.0, %v569_v7  ;;  %vm2429_vm8 = vcmp.lt.f32.partialorder %v834_v3, 0.0004427343 }
  0x96   : > { %v1731_v17 = vpop.eup %1730  ;;  %1736 = vlog2.f32 %v837_v11  ;;  %v2433_v19 = vsub.f32 %v417_v0, %v467_v1  ;;  %v418_v20 = vmax.f32 %v2410_v58, 0.0  ;;  %v841_v23 = vadd.f32 1.0, %v840_v12 }
  0x97   : > { %v827_v22 = vsel %vm2424_vm7, %v824_v5, %v821_v47  ;;  %v830_v48 = vmul.f32 0.6931472, %v1731_v17  ;;  %v468_v24 = vmul.f32 %v368_v13, %v2410_v58  ;;  %v843_v28 = vand.u32 2147483647, %v1727_v4 }
  0x98   : > { %v1733_v26 = vpop.eup %1732  ;;  %v1213_v27 = vadd.f32 %v827_v22, %v2396_v31  ;;  %v680_v29 = vmul.f32 1.442695, %v618_v15  ;;  %v682_v30 = vmul.f32 1.442695, %v619_v16  ;;  %v570_v35 = vand.u32 2147483647, %v2437_v21 }
  0x99   : > { %v1735_v51 = vpop.eup %1734  ;;  %v836_v63 = vsel %vm2429_vm8, %v833_v14, %v830_v48  ;;  %v846_v32 = vadd.f32 1.0, %v1733_v26  ;;  %v849_v34 = vmul.f32 -0.5, %v1733_v26  ;;  %v842_v40 = vmul.f32 %v1727_v4, %v841_v23  ;;  %v371_v14 = vld [vmem:[%s2281_s30 + $0x78] sm:$0xff] }
  0x9a   : > { %1263 = vst [vmem:[%s2353_s24 + $0x38] sm:$0xff] %v1213_v27  ;;  %v1340_v37 = vadd.f32 %v2391_v49, %v1213_v27  ;;  %v1214_v38 = vadd.f32 %v836_v63, %v2399_v36  ;;  %v855_v31 = vadd.f32 1.0, %v1735_v51  ;;  %v858_v39 = vmul.f32 -0.5, %v1735_v51  ;;  %v370_v49 = vld [vmem:[%s2281_s30 + $0x70] sm:$0xff]  ;;  %v2459_v36 = vld [vmem:[%s2273_s26 + $0x78] sm:$0xff]  ;;  %v323_v63 = vld [vmem:[%s2273_s26 + $0x88] sm:$0xff] }
  0x9b   : > { %1738 = vlog2.f32 %v846_v32  ;;  %v419_v33 = vmax.f32 %v2413_v41, 0.0  ;;  %v469_v53 = vmul.f32 %v369_v25, %v2413_v41  ;;  %vm2453_vm9 = vcmp.lt.f32.partialorder %v843_v28, 0.0004427343 }
  0x9c   : > { %v1737_v57 = vpop.eup %1736  ;;  %1264 = vst [vmem:[%s2353_s24 + $0x40] sm:$0xff] %v1214_v38  ;;  %v1317_v43 = vadd.f32 %v1316_v9, %v1214_v38  ;;  %v850_v50 = vadd.f32 1.0, %v849_v34  ;;  %1740 = vlog2.f32 %v855_v31  ;;  %v852_v54 = vand.u32 2147483647, %v1733_v26 }
  0x9d   : > { %v839_v52 = vmul.f32 0.6931472, %v1737_v57  ;;  %v859_v55 = vadd.f32 1.0, %v858_v39  ;;  %1742 = vpow2.f32 %v680_v29  ;;  %v861_v58 = vand.u32 2147483647, %v1735_v51  ;;  %v372_v29 = vld [vmem:[%s2281_s30 + $0x80] sm:$0xff] }
  0x9e   : > { %v2464_v41 = vsub.f32 %v418_v20, %v468_v24  ;;  %1744 = vpow2.f32 %v682_v30  ;;  %v620_v59 = vsub.f32 0.0, %v570_v35  ;;  %v420_v60 = vmax.f32 %v2437_v21, 0.0 }
  0x9f   : > { %v845_v45 = vsel %vm2453_vm9, %v842_v40, %v839_v52  ;;  %v470_v61 = vmul.f32 %v370_v49, %v2437_v21  ;;  %v571_v62 = vand.u32 2147483647, %v2459_v36  ;;  %v851_v1 = vmul.f32 %v1733_v26, %v850_v50 }
  0xa0   : > { %v1215_v0 = vadd.f32 %v845_v45, %v2402_v42  ;;  %v684_v2 = vmul.f32 1.442695, %v620_v59  ;;  %v572_v3 = vand.u32 2147483647, %v2462_v56  ;;  %vm2473_vm10 = vcmp.lt.f32.partialorder %v852_v54, 0.0004427343 }
  0xa1   : > { %v1739_v46 = vpop.eup %1738  ;;  %v860_v5 = vmul.f32 %v1735_v51, %v859_v55  ;;  %v2477_v7 = vsub.f32 %v419_v33, %v469_v53  ;;  %v621_v8 = vsub.f32 0.0, %v571_v62  ;;  %vm2480_vm11 = vcmp.lt.f32.partialorder %v861_v58, 0.0004427343  ;;  %v373_v53 = vld [vmem:[%s2281_s30 + $0x88] sm:$0xff]  ;;  %v2517_v58 = vld [vmem:[%s2273_s26 + $0x98] sm:$0xff] }
  0xa2   : > { %v1741_v9 = vpop.eup %1740  ;;  %1265 = vst [vmem:[%s2353_s24 + $0x48] sm:$0xff] %v1215_v0  ;;  %v1341_v10 = vadd.f32 %v1340_v37, %v1215_v0  ;;  %v848_v11 = vmul.f32 0.6931472, %v1739_v46  ;;  %1746 = vpow2.f32 %v684_v2  ;;  %v2484_v47 = vsub.f32 %v420_v60, %v470_v61 }
  0xa3   : > { %v1743_v12 = vpop.eup %1742  ;;  %v857_v13 = vmul.f32 0.6931472, %v1741_v9  ;;  %v421_v15 = vmax.f32 %v2459_v36, 0.0  ;;  %v686_v16 = vmul.f32 1.442695, %v621_v8  ;;  %v622_v22 = vsub.f32 0.0, %v572_v3 }
  0xa4   : > { %v1745_v17 = vpop.eup %1744  ;;  %v854_v18 = vsel %vm2473_vm10, %v851_v1, %v848_v11  ;;  %v864_v20 = vadd.f32 1.0, %v1743_v12  ;;  %v867_v21 = vmul.f32 -0.5, %v1743_v12  ;;  %v870_v27 = vand.u32 2147483647, %v1743_v12 }
  0xa5   : > { %v1216_v48 = vadd.f32 %v854_v18, %v2420_v6  ;;  %v863_v23 = vsel %vm2480_vm11, %v860_v5, %v857_v13  ;;  %v873_v24 = vadd.f32 1.0, %v1745_v17  ;;  %v876_v25 = vmul.f32 -0.5, %v1745_v17 }
  0xa6   : > { %v1217_v26 = vadd.f32 %v863_v23, %v2433_v19  ;;  %1748 = vlog2.f32 %v864_v20  ;;  %v471_v28 = vmul.f32 %v371_v14, %v2459_v36  ;;  %v868_v51 = vadd.f32 1.0, %v867_v21  ;;  %v2500_v19 = vld [vmem:[%s2273_s26 + $0x90] sm:$0xff] }
  0xa7   : > { %1266 = vst [vmem:[%s2353_s24 + $0x50] sm:$0xff] %v1216_v48  ;;  %v1318_v30 = vadd.f32 %v1317_v43, %v1216_v48  ;;  %1750 = vlog2.f32 %v873_v24  ;;  %v877_v6 = vadd.f32 1.0, %v876_v25  ;;  %v879_v35 = vand.u32 2147483647, %v1745_v17  ;;  %v374_v21 = vld [vmem:[%s2281_s30 + $0x90] sm:$0xff] }
  0xa8   : > { %v1747_v32 = vpop.eup %1746  ;;  %1267 = vst [vmem:[%s2353_s24 + $0x58] sm:$0xff] %v1217_v26  ;;  %v1342_v34 = vadd.f32 %v1341_v10, %v1217_v26  ;;  %1752 = vpow2.f32 %v686_v16  ;;  %v688_v37 = vmul.f32 1.442695, %v622_v22  ;;  %v422_v39 = vmax.f32 %v2462_v56, 0.0 }
  0xa9   : > { %v882_v38 = vadd.f32 1.0, %v1747_v32  ;;  %v885_v31 = vmul.f32 -0.5, %v1747_v32  ;;  %v472_v40 = vmul.f32 %v372_v29, %v2462_v56  ;;  %v2504_v33 = vsub.f32 %v421_v15, %v471_v28  ;;  %v377_v15 = vld [vmem:[%s2281_s30 + $0xa8] sm:$0xff] }
  0xaa   : > { %1754 = vpow2.f32 %v688_v37  ;;  %v423_v57 = vmax.f32 %v323_v63, 0.0  ;;  %v573_v43 = vand.u32 2147483647, %v323_v63  ;;  %v869_v44 = vmul.f32 %v1743_v12, %v868_v51  ;;  %v375_v51 = vld [vmem:[%s2281_s30 + $0x98] sm:$0xff] }
  0xab   : > { %1756 = vlog2.f32 %v882_v38  ;;  %v886_v50 = vadd.f32 1.0, %v885_v31  ;;  %v574_v49 = vand.u32 2147483647, %v2500_v19  ;;  %vm2508_vm12 = vcmp.lt.f32.partialorder %v870_v27, 0.0004427343 }
  0xac   : > { %v1749_v36 = vpop.eup %1748  ;;  %v878_v54 = vmul.f32 %v1745_v17, %v877_v6  ;;  %vm2512_vm13 = vcmp.lt.f32.partialorder %v879_v35, 0.0004427343  ;;  %v623_v56 = vsub.f32 0.0, %v573_v43  ;;  %v888_v60 = vand.u32 2147483647, %v1747_v32 }
  0xad   : > { %v1751_v59 = vpop.eup %1750  ;;  %v866_v45 = vmul.f32 0.6931472, %v1749_v36  ;;  %v473_v61 = vmul.f32 %v373_v53, %v323_v63  ;;  %v624_v62 = vsub.f32 0.0, %v574_v49  ;;  %v887_v2 = vmul.f32 %v1747_v32, %v886_v50 }
  0xae   : > { %v1753_v0 = vpop.eup %1752  ;;  %v875_v1 = vmul.f32 0.6931472, %v1751_v59  ;;  %v2519_v3 = vsub.f32 %v422_v39, %v472_v40  ;;  %v690_v46 = vmul.f32 1.442695, %v623_v56  ;;  %v575_v9 = vand.u32 2147483647, %v2517_v58 }
  0xaf   : > { %v872_v4 = vsel %vm2508_vm12, %v869_v44, %v866_v45  ;;  %v891_v5 = vadd.f32 1.0, %v1753_v0  ;;  %v894_v8 = vmul.f32 -0.5, %v1753_v0  ;;  %v692_v12 = vmul.f32 1.442695, %v624_v62  ;;  %v376_v56 = vld [vmem:[%s2281_s30 + $0xa0] sm:$0xff] }
  0xb0   : > { %v1755_v10 = vpop.eup %1754  ;;  %v1218_v11 = vadd.f32 %v872_v4, %v2464_v41  ;;  %v881_v42 = vsel %vm2512_vm13, %v878_v54, %v875_v1  ;;  %1758 = vpow2.f32 %v690_v46  ;;  %vm2528_vm14 = vcmp.lt.f32.partialorder %v888_v60, 0.0004427343 }
  0xb1   : > { %v1757_v13 = vpop.eup %1756  ;;  %v1219_v14 = vadd.f32 %v881_v42, %v2477_v7  ;;  %1760 = vlog2.f32 %v891_v5  ;;  %v895_v16 = vadd.f32 1.0, %v894_v8  ;;  %v900_v20 = vadd.f32 1.0, %v1755_v10  ;;  %v2538_v7 = vld [vmem:[%s2273_s26 + $0xa0] sm:$0xff]  ;;  %v2574_v5 = vld [vmem:[%s2273_s26 + $0xb0] sm:$0xff] }
  0xb2   : > { %1268 = vst [vmem:[%s2353_s24 + $0x60] sm:$0xff] %v1218_v11  ;;  %v1319_v17 = vadd.f32 %v1318_v30, %v1218_v11  ;;  %v884_v18 = vmul.f32 0.6931472, %v1757_v13  ;;  %v903_v41 = vmul.f32 -0.5, %v1755_v10  ;;  %v897_v48 = vand.u32 2147483647, %v1753_v0 }
  0xb3   : > { %1269 = vst [vmem:[%s2353_s24 + $0x68] sm:$0xff] %v1219_v14  ;;  %v1343_v22 = vadd.f32 %v1342_v34, %v1219_v14  ;;  %v2535_v23 = vsub.f32 %v423_v57, %v473_v61  ;;  %1762 = vpow2.f32 %v692_v12  ;;  %v424_v25 = vmax.f32 %v2500_v19, 0.0 }
  0xb4   : > { %v890_v24 = vsel %vm2528_vm14, %v887_v2, %v884_v18  ;;  %1764 = vlog2.f32 %v900_v20  ;;  %v625_v26 = vsub.f32 0.0, %v575_v9  ;;  %v904_v28 = vadd.f32 1.0, %v903_v41 }
  0xb5   : > { %v1220_v27 = vadd.f32 %v890_v24, %v2484_v47  ;;  %v906_v29 = vand.u32 2147483647, %v1755_v10  ;;  %v474_v30 = vmul.f32 %v374_v21, %v2500_v19  ;;  %v896_v63 = vmul.f32 %v1753_v0, %v895_v16 }
  0xb6   : > { %v1759_v6 = vpop.eup %1758  ;;  %v425_v32 = vmax.f32 %v2517_v58, 0.0  ;;  %v694_v34 = vmul.f32 1.442695, %v625_v26  ;;  %v576_v35 = vand.u32 2147483647, %v2538_v7  ;;  %v475_v40 = vmul.f32 %v375_v51, %v2517_v58  ;;  %v2564_v58 = vld [vmem:[%s2273_s26 + $0xa8] sm:$0xff] }
  0xb7   : > { %v1761_v37 = vpop.eup %1760  ;;  %1270 = vst [vmem:[%s2353_s24 + $0x70] sm:$0xff] %v1220_v27  ;;  %v1320_v38 = vadd.f32 %v1319_v17, %v1220_v27  ;;  %vm2549_vm15 = vcmp.lt.f32.partialorder %v897_v48, 0.0004427343  ;;  %v909_v47 = vadd.f32 1.0, %v1759_v6  ;;  %v912_v39 = vmul.f32 -0.5, %v1759_v6  ;;  %v378_v26 = vld [vmem:[%s2281_s30 + $0xb0] sm:$0xff] }
  0xb8   : > { %v893_v19 = vmul.f32 0.6931472, %v1761_v37  ;;  %1766 = vpow2.f32 %v694_v34  ;;  %v626_v53 = vsub.f32 0.0, %v576_v35  ;;  %v905_v43 = vmul.f32 %v1755_v10, %v904_v28  ;;  %v2595_v28 = vld [vmem:[%s2273_s26 + $0xb8] sm:$0xff] }
  0xb9   : > { %v1763_v57 = vpop.eup %1762  ;;  %vm2554_vm0 = vcmp.lt.f32.partialorder %v906_v29, 0.0004427343  ;;  %1768 = vlog2.f32 %v909_v47  ;;  %v2558_v50 = vsub.f32 %v424_v25, %v474_v30  ;;  %v913_v52 = vadd.f32 1.0, %v912_v39 }
  0xba   : > { %v1765_v49 = vpop.eup %1764  ;;  %v899_v36 = vsel %vm2549_vm15, %v896_v63, %v893_v19  ;;  %v918_v54 = vadd.f32 1.0, %v1763_v57  ;;  %v921_v55 = vmul.f32 -0.5, %v1763_v57  ;;  %v915_v60 = vand.u32 2147483647, %v1759_v6 }
  0xbb   : > { %v1221_v59 = vadd.f32 %v899_v36, %v2504_v33  ;;  %v902_v45 = vmul.f32 0.6931472, %v1765_v49  ;;  %v696_v61 = vmul.f32 1.442695, %v626_v53  ;;  %v924_v0 = vand.u32 2147483647, %v1763_v57 }
  0xbc   : > { %1770 = vlog2.f32 %v918_v54  ;;  %v922_v62 = vadd.f32 1.0, %v921_v55  ;;  %v2567_v1 = vsub.f32 %v425_v32, %v475_v40  ;;  %v577_v4 = vand.u32 2147483647, %v2564_v58 }
  0xbd   : > { %1271 = vst [vmem:[%s2353_s24 + $0x78] sm:$0xff] %v1221_v59  ;;  %v1344_v2 = vadd.f32 %v1343_v22, %v1221_v59  ;;  %v908_v46 = vsel %vm2554_vm0, %v905_v43, %v902_v45  ;;  %1772 = vpow2.f32 %v696_v61  ;;  %v914_v9 = vmul.f32 %v1759_v6, %v913_v52 }
  0xbe   : > { %v1767_v33 = vpop.eup %1766  ;;  %v1222_v8 = vadd.f32 %v908_v46, %v2519_v3  ;;  %v426_v10 = vmax.f32 %v2538_v7, 0.0  ;;  %v476_v11 = vmul.f32 %v376_v56, %v2538_v7  ;;  %vm2579_vm1 = vcmp.lt.f32.partialorder %v915_v60, 0.0004427343 }
  0xbf   : > { %v1769_v42 = vpop.eup %1768  ;;  %v927_v13 = vadd.f32 1.0, %v1767_v33  ;;  %v930_v14 = vmul.f32 -0.5, %v1767_v33  ;;  %v627_v16 = vsub.f32 0.0, %v577_v4  ;;  %v427_v3 = vmax.f32 %v2564_v58, 0.0 }
  0xc0   : > { %1272 = vst [vmem:[%s2353_s24 + $0x80] sm:$0xff] %v1222_v8  ;;  %v1321_v17 = vadd.f32 %v1320_v38, %v1222_v8  ;;  %v911_v18 = vmul.f32 0.6931472, %v1769_v42  ;;  %v578_v20 = vand.u32 2147483647, %v2574_v5  ;;  %v923_v41 = vmul.f32 %v1763_v57, %v922_v62  ;;  %v380_v8 = vld [vmem:[%s2281_s30 + $0xc0] sm:$0xff] }
  0xc1   : > { %vm2587_vm2 = vcmp.lt.f32.partialorder %v924_v0, 0.0004427343  ;;  %1774 = vlog2.f32 %v927_v13  ;;  %v698_v22 = vmul.f32 1.442695, %v627_v16  ;;  %v931_v24 = vadd.f32 1.0, %v930_v14 }
  0xc2   : > { %v1771_v48 = vpop.eup %1770  ;;  %v917_v7 = vsel %vm2579_vm1, %v914_v9, %v911_v18  ;;  %v933_v25 = vand.u32 2147483647, %v1767_v33  ;;  %v628_v27 = vsub.f32 0.0, %v578_v20  ;;  %v477_v6 = vmul.f32 %v377_v15, %v2564_v58  ;;  %v2618_v58 = vld [vmem:[%s2273_s26 + $0xc8] sm:$0xff] }
  0xc3   : > { %v1773_v29 = vpop.eup %1772  ;;  %v1223_v30 = vadd.f32 %v917_v7, %v2535_v23  ;;  %v920_v51 = vmul.f32 0.6931472, %v1771_v48  ;;  %1776 = vpow2.f32 %v698_v22  ;;  %v428_v34 = vmax.f32 %v2574_v5, 0.0  ;;  %v2606_v23 = vld [vmem:[%s2273_s26 + $0xc0] sm:$0xff] }
  0xc4   : > { %v936_v63 = vadd.f32 1.0, %v1773_v29  ;;  %v939_v32 = vmul.f32 -0.5, %v1773_v29  ;;  %v700_v35 = vmul.f32 1.442695, %v628_v27  ;;  %v478_v31 = vmul.f32 %v378_v26, %v2574_v5  ;;  %v2644_v27 = vld [vmem:[%s2273_s26 + $0xd8] sm:$0xff] }
  0xc5   : > { %1273 = vst [vmem:[%s2353_s24 + $0x88] sm:$0xff] %v1223_v30  ;;  %v1345_v37 = vadd.f32 %v1344_v2, %v1223_v30  ;;  %v926_v38 = vsel %vm2587_vm2, %v923_v41, %v920_v51  ;;  %v579_v47 = vand.u32 2147483647, %v2595_v28  ;;  %v932_v19 = vmul.f32 %v1767_v33, %v931_v24  ;;  %v379_v2 = vld [vmem:[%s2281_s30 + $0xb8] sm:$0xff]  ;;  %v2694_v30 = vld [vmem:[%s2273_s26 + $0xf0] sm:$0xff] }
  0xc6   : > { %v1224_v39 = vadd.f32 %v926_v38, %v2558_v50  ;;  %vm2609_vm3 = vcmp.lt.f32.partialorder %v933_v25, 0.0004427343  ;;  %1778 = vlog2.f32 %v936_v63  ;;  %v940_v57 = vadd.f32 1.0, %v939_v32  ;;  %v381_v38 = vld [vmem:[%s2281_s30 + $0xc8] sm:$0xff] }
  0xc7   : > { %v1775_v53 = vpop.eup %1774  ;;  %v942_v43 = vand.u32 2147483647, %v1773_v29  ;;  %1780 = vpow2.f32 %v700_v35  ;;  %v629_v44 = vsub.f32 0.0, %v579_v47  ;;  %v580_v52 = vand.u32 2147483647, %v2606_v23 }
  0xc8   : > { %1274 = vst [vmem:[%s2353_s24 + $0x90] sm:$0xff] %v1224_v39  ;;  %v1322_v49 = vadd.f32 %v1321_v17, %v1224_v39  ;;  %v929_v36 = vmul.f32 0.6931472, %v1775_v53  ;;  %v526_v50 = vsub.f32 %v426_v10, %v476_v11  ;;  %v2615_v55 = vsub.f32 %v427_v3, %v477_v6  ;;  %v2636_v17 = vld [vmem:[%s2273_s26 + $0xd0] sm:$0xff] }
  0xc9   : > { %v1777_v54 = vpop.eup %1776  ;;  %v702_v56 = vmul.f32 1.442695, %v629_v44  ;;  %v2622_v61 = vsub.f32 %v428_v34, %v478_v31  ;;  %v941_v0 = vmul.f32 %v1773_v29, %v940_v57  ;;  %v630_v46 = vsub.f32 0.0, %v580_v52 }
  0xca   : > { %v935_v59 = vsel %vm2609_vm3, %v932_v19, %v929_v36  ;;  %v945_v45 = vadd.f32 1.0, %v1777_v54  ;;  %v948_v60 = vmul.f32 -0.5, %v1777_v54  ;;  %vm2626_vm4 = vcmp.lt.f32.partialorder %v942_v43, 0.0004427343  ;;  %v2663_v36 = vld [vmem:[%s2273_s26 + $0xe0] sm:$0xff] }
  0xcb   : > { %v1225_v62 = vadd.f32 %v935_v59, %v2567_v1  ;;  %1782 = vpow2.f32 %v702_v56  ;;  %v429_v33 = vmax.f32 %v2595_v28, 0.0  ;;  %v581_v9 = vand.u32 2147483647, %v2618_v58 }
  0xcc   : > { %v1779_v4 = vpop.eup %1778  ;;  %1784 = vlog2.f32 %v945_v45  ;;  %v949_v42 = vadd.f32 1.0, %v948_v60  ;;  %v704_v12 = vmul.f32 1.442695, %v630_v46  ;;  %v951_v13 = vand.u32 2147483647, %v1777_v54  ;;  %v382_v45 = vld [vmem:[%s2281_s30 + $0xd0] sm:$0xff] }
  0xcd   : > { %v1781_v10 = vpop.eup %1780  ;;  %1275 = vst [vmem:[%s2353_s24 + $0x98] sm:$0xff] %v1225_v62  ;;  %v1346_v11 = vadd.f32 %v1345_v37, %v1225_v62  ;;  %v938_v1 = vmul.f32 0.6931472, %v1779_v4  ;;  %v479_v16 = vmul.f32 %v379_v2, %v2595_v28  ;;  %v430_v3 = vmax.f32 %v2606_v23, 0.0 }
  0xce   : > { %v954_v14 = vadd.f32 1.0, %v1781_v10  ;;  %v957_v15 = vmul.f32 -0.5, %v1781_v10  ;;  %1786 = vpow2.f32 %v704_v12  ;;  %v631_v20 = vsub.f32 0.0, %v581_v9 }
  0xcf   : > { %v944_v18 = vsel %vm2626_vm4, %v941_v0, %v938_v1  ;;  %v960_v21 = vand.u32 2147483647, %v1781_v10  ;;  %v480_v22 = vmul.f32 %v380_v8, %v2606_v23  ;;  %v950_v7 = vmul.f32 %v1777_v54, %v949_v42 }
  0xd0   : > { %v1226_v41 = vadd.f32 %v944_v18, %v526_v50  ;;  %1788 = vlog2.f32 %v954_v14  ;;  %v958_v24 = vadd.f32 1.0, %v957_v15  ;;  %v706_v25 = vmul.f32 1.442695, %v631_v20  ;;  %v2687_v18 = vld [vmem:[%s2273_s26 + $0xe8] sm:$0xff] }
  0xd1   : > { %v1783_v48 = vpop.eup %1782  ;;  %v582_v26 = vand.u32 2147483647, %v2636_v17  ;;  %vm2647_vm5 = vcmp.lt.f32.partialorder %v951_v13, 0.0004427343  ;;  %v529_v32 = vsub.f32 %v429_v33, %v479_v16  ;;  %vm2651_vm6 = vcmp.lt.f32.partialorder %v960_v21, 0.0004427343 }
  0xd2   : > { %v1785_v28 = vpop.eup %1784  ;;  %1276 = vst [vmem:[%s2353_s24 + $0xa0] sm:$0xff] %v1226_v41  ;;  %v1323_v29 = vadd.f32 %v1322_v49, %v1226_v41  ;;  %v963_v51 = vadd.f32 1.0, %v1783_v48  ;;  %v966_v6 = vmul.f32 -0.5, %v1783_v48  ;;  %1790 = vpow2.f32 %v706_v25 }
  0xd3   : > { %v947_v63 = vmul.f32 0.6931472, %v1785_v28  ;;  %v632_v34 = vsub.f32 0.0, %v582_v26  ;;  %v2655_v37 = vsub.f32 %v430_v3, %v480_v22  ;;  %v583_v31 = vand.u32 2147483647, %v2644_v27  ;;  %v383_v26 = vld [vmem:[%s2281_s30 + $0xd8] sm:$0xff] }
  0xd4   : > { %1792 = vlog2.f32 %v963_v51  ;;  %v1787_v47 = vpop.eup %1786  ;;  %v959_v39 = vmul.f32 %v1781_v10, %v958_v24  ;;  %v967_v19 = vadd.f32 1.0, %v966_v6  ;;  %v969_v43 = vand.u32 2147483647, %v1783_v48 }
  0xd5   : > { %v953_v23 = vsel %vm2647_vm5, %v950_v7, %v947_v63  ;;  %v708_v40 = vmul.f32 1.442695, %v632_v34  ;;  %v972_v44 = vadd.f32 1.0, %v1787_v47  ;;  %v975_v49 = vmul.f32 -0.5, %v1787_v47 }
  0xd6   : > { %v1789_v53 = vpop.eup %1788  ;;  %v1227_v57 = vadd.f32 %v953_v23, %v2615_v55  ;;  %v431_v54 = vmax.f32 %v2618_v58, 0.0  ;;  %v481_v50 = vmul.f32 %v381_v38, %v2618_v58  ;;  %v978_v59 = vand.u32 2147483647, %v1787_v47 }
  0xd7   : > { %v956_v52 = vmul.f32 0.6931472, %v1789_v53  ;;  %1794 = vpow2.f32 %v708_v40  ;;  %v633_v60 = vsub.f32 0.0, %v583_v31  ;;  %v968_v0 = vmul.f32 %v1783_v48, %v967_v19 }
  0xd8   : > { %1277 = vst [vmem:[%s2353_s24 + $0xa8] sm:$0xff] %v1227_v57  ;;  %v1347_v56 = vadd.f32 %v1346_v11, %v1227_v57  ;;  %1796 = vlog2.f32 %v972_v44  ;;  %v1791_v62 = vpop.eup %1790  ;;  %v976_v2 = vadd.f32 1.0, %v975_v49  ;;  %v584_v46 = vand.u32 2147483647, %v2663_v36 }
  0xd9   : > { %v962_v55 = vsel %vm2651_vm6, %v959_v39, %v956_v52  ;;  %vm2673_vm7 = vcmp.lt.f32.partialorder %v969_v43, 0.0004427343  ;;  %v981_v33 = vadd.f32 1.0, %v1791_v62  ;;  %v984_v8 = vmul.f32 -0.5, %v1791_v62 }
  0xda   : > { %v1793_v4 = vpop.eup %1792  ;;  %v1228_v5 = vadd.f32 %v962_v55, %v2622_v61  ;;  %v432_v10 = vmax.f32 %v2636_v17, 0.0  ;;  %v482_v11 = vmul.f32 %v382_v45, %v2636_v17  ;;  %v710_v1 = vmul.f32 1.442695, %v633_v60 }
  0xdb   : > { %v965_v9 = vmul.f32 0.6931472, %v1793_v4  ;;  %vm2680_vm8 = vcmp.lt.f32.partialorder %v978_v59, 0.0004427343  ;;  %1798 = vlog2.f32 %v981_v33  ;;  %v634_v61 = vsub.f32 0.0, %v584_v46 }
  0xdc   : > { %1278 = vst [vmem:[%s2353_s24 + $0xb0] sm:$0xff] %v1228_v5  ;;  %v1324_v42 = vadd.f32 %v1323_v29, %v1228_v5  ;;  %v977_v15 = vmul.f32 %v1787_v47, %v976_v2  ;;  %v985_v16 = vadd.f32 1.0, %v984_v8  ;;  %1800 = vpow2.f32 %v710_v1  ;;  %v2720_v5 = vld [vmem:[%s2273_s26 + $0x100] sm:$0xff] }
  0xdd   : > { %v1795_v13 = vpop.eup %1794  ;;  %v971_v14 = vsel %vm2673_vm7, %v968_v0, %v965_v9  ;;  %v987_v20 = vand.u32 2147483647, %v1791_v62  ;;  %v531_v48 = vsub.f32 %v431_v54, %v481_v50  ;;  %v532_v7 = vsub.f32 %v432_v10, %v482_v11  ;;  %v2716_v0 = vld [vmem:[%s2273_s26 + $0xf8] sm:$0xff]  ;;  %v385_v10 = vld [vmem:[%s2281_s30 + $0xe8] sm:$0xff] }
  0xde   : > { %v1797_v17 = vpop.eup %1796  ;;  %v1229_v3 = vadd.f32 %v971_v14, %v529_v32  ;;  %v990_v41 = vadd.f32 1.0, %v1795_v13  ;;  %v993_v21 = vmul.f32 -0.5, %v1795_v13  ;;  %v712_v24 = vmul.f32 1.442695, %v634_v61  ;;  %v384_v32 = vld [vmem:[%s2281_s30 + $0xe0] sm:$0xff]  ;;  %v386_v61 = vld [vmem:[%s2281_s30 + $0xf0] sm:$0xff] }
  0xdf   : > { %v974_v22 = vmul.f32 0.6931472, %v1797_v17  ;;  %v433_v28 = vmax.f32 %v2644_v27, 0.0  ;;  %v585_v29 = vand.u32 2147483647, %v2687_v18  ;;  %v986_v6 = vmul.f32 %v1791_v62, %v985_v16  ;;  %v2730_v14 = vld [vmem:[%s2273_s26 + $0x108] sm:$0xff] }
  0xe0   : > { %1279 = vst [vmem:[%s2353_s24 + $0xb8] sm:$0xff] %v1229_v3  ;;  %v1348_v25 = vadd.f32 %v1347_v56, %v1229_v3  ;;  %1802 = vlog2.f32 %v990_v41  ;;  %v994_v63 = vadd.f32 1.0, %v993_v21  ;;  %vm2700_vm9 = vcmp.lt.f32.partialorder %v987_v20, 0.0004427343 }
  0xe1   : > { %v980_v51 = vsel %vm2680_vm8, %v977_v15, %v974_v22  ;;  %1804 = vpow2.f32 %v712_v24  ;;  %v1799_v34 = vpop.eup %1798  ;;  %v996_v31 = vand.u32 2147483647, %v1795_v13  ;;  %v635_v47 = vsub.f32 0.0, %v585_v29 }
  0xe2   : > { %v1230_v35 = vadd.f32 %v980_v51, %v2655_v37  ;;  %v1801_v23 = vpop.eup %1800  ;;  %v983_v39 = vmul.f32 0.6931472, %v1799_v34  ;;  %v483_v19 = vmul.f32 %v383_v26, %v2644_v27  ;;  %v434_v40 = vmax.f32 %v2663_v36, 0.0 }
  0xe3   : > { %v586_v53 = vand.u32 2147483647, %v2694_v30  ;;  %v999_v43 = vadd.f32 1.0, %v1801_v23  ;;  %v1002_v44 = vmul.f32 -0.5, %v1801_v23  ;;  %v484_v37 = vmul.f32 %v384_v32, %v2663_v36 }
  0xe4   : > { %1280 = vst [vmem:[%s2353_s24 + $0xc0] sm:$0xff] %v1230_v35  ;;  %v1325_v57 = vadd.f32 %v1324_v42, %v1230_v35  ;;  %v989_v49 = vsel %vm2700_vm9, %v986_v6, %v983_v39  ;;  %v995_v52 = vmul.f32 %v1795_v13, %v994_v63  ;;  %v714_v54 = vmul.f32 1.442695, %v635_v47 }
  0xe5   : > { %v636_v50 = vsub.f32 0.0, %v586_v53  ;;  %v1231_v56 = vadd.f32 %v989_v49, %v531_v48  ;;  %vm2711_vm10 = vcmp.lt.f32.partialorder %v996_v31, 0.0004427343  ;;  %1806 = vlog2.f32 %v999_v43  ;;  %v2757_v49 = vld [vmem:[%s2273_s26 + $0x118] sm:$0xff] }
  0xe6   : > { %v1803_v27 = vpop.eup %1802  ;;  %v1005_v45 = vand.u32 2147483647, %v1801_v23  ;;  %v1003_v36 = vadd.f32 1.0, %v1002_v44  ;;  %1808 = vpow2.f32 %v714_v54  ;;  %v533_v33 = vsub.f32 %v433_v28, %v483_v19 }
  0xe7   : > { %v1805_v60 = vpop.eup %1804  ;;  %v992_v62 = vmul.f32 0.6931472, %v1803_v27  ;;  %v716_v55 = vmul.f32 1.442695, %v636_v50  ;;  %1281 = vst [vmem:[%s2353_s24 + $0xc8] sm:$0xff] %v1231_v56  ;;  %v1349_v2 = vadd.f32 %v1348_v25, %v1231_v56  ;;  %v534_v9 = vsub.f32 %v434_v40, %v484_v37 }
  0xe8   : > { %v1008_v46 = vadd.f32 1.0, %v1805_v60  ;;  %v1011_v4 = vmul.f32 -0.5, %v1805_v60  ;;  %v587_v11 = vand.u32 2147483647, %v2716_v0  ;;  %v1004_v1 = vmul.f32 %v1801_v23, %v1003_v36 }
  0xe9   : > { %v998_v58 = vsel %vm2711_vm10, %v995_v52, %v992_v62  ;;  %1810 = vpow2.f32 %v716_v55  ;;  %v435_v12 = vmax.f32 %v2687_v18, 0.0  ;;  %v588_v13 = vand.u32 2147483647, %v2720_v5 }
  0xea   : > { %v1232_v8 = vadd.f32 %v998_v58, %v532_v7  ;;  %1812 = vlog2.f32 %v1008_v46  ;;  %v1012_v42 = vadd.f32 1.0, %v1011_v4  ;;  %vm2733_vm11 = vcmp.lt.f32.partialorder %v1005_v45, 0.0004427343 }
  0xeb   : > { %v1807_v15 = vpop.eup %1806  ;;  %v1014_v3 = vand.u32 2147483647, %v1805_v60  ;;  %v637_v20 = vsub.f32 0.0, %v587_v11  ;;  %v485_v22 = vmul.f32 %v385_v10, %v2687_v18  ;;  %v436_v48 = vmax.f32 %v2694_v30, 0.0 }
  0xec   : > { %1282 = vst [vmem:[%s2353_s24 + $0xd0] sm:$0xff] %v1232_v8  ;;  %v1326_v16 = vadd.f32 %v1325_v57, %v1232_v8  ;;  %v1809_v41 = vpop.eup %1808  ;;  %v1001_v21 = vmul.f32 0.6931472, %v1807_v15  ;;  %v638_v7 = vsub.f32 0.0, %v588_v13  ;;  %v486_v26 = vmul.f32 %v386_v61, %v2694_v30  ;;  %v387_v30 = vld [vmem:[%s2281_s30 + $0xf8] sm:$0xff]  ;;  %v2751_v57 = vld [vmem:[%s2273_s26 + $0x110] sm:$0xff] }
  0xed   : > { %v1017_v24 = vadd.f32 1.0, %v1809_v41  ;;  %v1020_v25 = vmul.f32 -0.5, %v1809_v41  ;;  %v718_v28 = vmul.f32 1.442695, %v637_v20  ;;  %v1013_v6 = vmul.f32 %v1805_v60, %v1012_v42 }
  0xee   : > { %v1007_v51 = vsel %vm2733_vm11, %v1004_v1, %v1001_v21  ;;  %v437_v63 = vmax.f32 %v2716_v0, 0.0  ;;  %v589_v32 = vand.u32 2147483647, %v2730_v14  ;;  %vm2744_vm12 = vcmp.lt.f32.partialorder %v1014_v3, 0.0004427343  ;;  %v388_v3 = vld [vmem:[%s2281_s30 + $0x100] sm:$0xff] }
  0xef   : > { %v1811_v29 = vpop.eup %1810  ;;  %v1233_v34 = vadd.f32 %v1007_v51, %v533_v33  ;;  %1814 = vlog2.f32 %v1017_v24  ;;  %v720_v38 = vmul.f32 1.442695, %v638_v7  ;;  %v1021_v47 = vadd.f32 1.0, %v1020_v25 }
  0xf0   : > { %v1813_v18 = vpop.eup %1812  ;;  %v1026_v23 = vadd.f32 1.0, %v1811_v29  ;;  %v1029_v39 = vmul.f32 -0.5, %v1811_v29  ;;  %v1023_v40 = vand.u32 2147483647, %v1809_v41  ;;  %1816 = vpow2.f32 %v718_v28 }
  0xf1   : > { %v1010_v31 = vmul.f32 0.6931472, %v1813_v18  ;;  %1283 = vst [vmem:[%s2353_s24 + $0xd8] sm:$0xff] %v1233_v34  ;;  %v1350_v19 = vadd.f32 %v1349_v2, %v1233_v34  ;;  %v639_v53 = vsub.f32 0.0, %v589_v32  ;;  %v1032_v44 = vand.u32 2147483647, %v1811_v29 }
  0xf2   : > { %1818 = vlog2.f32 %v1026_v23  ;;  %v487_v37 = vmul.f32 %v387_v30, %v2716_v0  ;;  %v1030_v54 = vadd.f32 1.0, %v1029_v39  ;;  %v535_v27 = vsub.f32 %v435_v12, %v485_v22  ;;  %v2767_v2 = vld [vmem:[%s2273_s26 + $0x120] sm:$0xff]  ;;  %v2790_v30 = vld [vmem:[%s2273_s26 + $0x128] sm:$0xff] }
  0xf3   : > { %v1016_v43 = vsel %vm2744_vm12, %v1013_v6, %v1010_v31  ;;  %1820 = vpow2.f32 %v720_v38  ;;  %v722_v50 = vmul.f32 1.442695, %v639_v53  ;;  %v1022_v56 = vmul.f32 %v1809_v41, %v1021_v47 }
  0xf4   : > { %v1234_v52 = vadd.f32 %v1016_v43, %v534_v9  ;;  %v590_v59 = vand.u32 2147483647, %v2751_v57  ;;  %vm2761_vm13 = vcmp.lt.f32.partialorder %v1023_v40, 0.0004427343  ;;  %v591_v36 = vand.u32 2147483647, %v2757_v49 }
  0xf5   : > { %v1815_v45 = vpop.eup %1814  ;;  %1822 = vpow2.f32 %v722_v50  ;;  %v536_v4 = vsub.f32 %v436_v48, %v486_v26  ;;  %v1031_v58 = vmul.f32 %v1811_v29, %v1030_v54  ;;  %vm2769_vm14 = vcmp.lt.f32.partialorder %v1032_v44, 0.0004427343  ;;  %v389_v26 = vld [vmem:[%s2281_s30 + $0x108] sm:$0xff]  ;;  %v2799_v44 = vld [vmem:[%s2273_s26 + $0x130] sm:$0xff] }
  0xf6   : > { %1284 = vst [vmem:[%s2353_s24 + $0xe0] sm:$0xff] %v1234_v52  ;;  %v1327_v60 = vadd.f32 %v1326_v16, %v1234_v52  ;;  %v1019_v55 = vmul.f32 0.6931472, %v1815_v45  ;;  %v640_v0 = vsub.f32 0.0, %v590_v59  ;;  %v1817_v46 = vpop.eup %1816  ;;  %v537_v8 = vsub.f32 %v437_v63, %v487_v37 }
  0xf7   : > { %v1035_v11 = vadd.f32 1.0, %v1817_v46  ;;  %v1038_v1 = vmul.f32 -0.5, %v1817_v46  ;;  %v641_v42 = vsub.f32 0.0, %v591_v36  ;;  %v438_v15 = vmax.f32 %v2720_v5, 0.0 }
  0xf8   : > { %v1819_v9 = vpop.eup %1818  ;;  %v1025_v10 = vsel %vm2761_vm13, %v1022_v56, %v1019_v55  ;;  %v592_v16 = vand.u32 2147483647, %v2767_v2  ;;  %v1041_v17 = vand.u32 2147483647, %v1817_v46  ;;  %v724_v41 = vmul.f32 1.442695, %v640_v0 }
  0xf9   : > { %v1821_v12 = vpop.eup %1820  ;;  %v1235_v61 = vadd.f32 %v1025_v10, %v535_v27  ;;  %v1028_v13 = vmul.f32 0.6931472, %v1819_v9  ;;  %1824 = vlog2.f32 %v1035_v11  ;;  %v1039_v7 = vadd.f32 1.0, %v1038_v1  ;;  %v2823_v11 = vld [vmem:[%s2273_s26 + $0x138] sm:$0xff] }
  0xfa   : > { %v1044_v20 = vadd.f32 1.0, %v1821_v12  ;;  %v1047_v24 = vmul.f32 -0.5, %v1821_v12  ;;  %v726_v29 = vmul.f32 1.442695, %v641_v42  ;;  %v488_v51 = vmul.f32 %v388_v3, %v2720_v5 }
  0xfb   : > { %v1823_v21 = vpop.eup %1822  ;;  %1285 = vst [vmem:[%s2353_s24 + $0xe8] sm:$0xff] %v1235_v61  ;;  %v2779_v22 = vadd.f32 %v1350_v19, %v1235_v61  ;;  %v1034_v48 = vsel %vm2769_vm14, %v1031_v58, %v1028_v13  ;;  %v439_v63 = vmax.f32 %v2730_v14, 0.0  ;;  %v1050_v34 = vand.u32 2147483647, %v1821_v12 }
  0xfc   : > { %v1236_v25 = vadd.f32 %v1034_v48, %v536_v4  ;;  %1826 = vlog2.f32 %v1044_v20  ;;  %v1053_v28 = vadd.f32 1.0, %v1823_v21  ;;  %v1048_v6 = vadd.f32 1.0, %v1047_v24  ;;  %v390_v4 = vld [vmem:[%s2281_s30 + $0x110] sm:$0xff] }
  0xfd   : > { %v1056_v32 = vmul.f32 -0.5, %v1823_v21  ;;  %v642_v35 = vsub.f32 0.0, %v592_v16  ;;  %v1040_v38 = vmul.f32 %v1817_v46, %v1039_v7  ;;  %v489_v31 = vmul.f32 %v389_v26, %v2730_v14 }
  0xfe   : > { %1286 = vst [vmem:[%s2353_s24 + $0xf0] sm:$0xff] %v1236_v25  ;;  %v2787_v18 = vadd.f32 %v1327_v60, %v1236_v25  ;;  %1828 = vlog2.f32 %v1053_v28  ;;  %vm2793_vm15 = vcmp.lt.f32.partialorder %v1041_v17, 0.0004427343  ;;  %v1059_v39 = vand.u32 2147483647, %v1823_v21  ;;  %v391_v17 = vld [vmem:[%s2281_s30 + $0x118] sm:$0xff] }
  0xff   : > { %v1057_v47 = vadd.f32 1.0, %v1056_v32  ;;  %1830 = vpow2.f32 %v724_v41  ;;  %v1825_v23 = vpop.eup %1824  ;;  %v728_v19 = vmul.f32 1.442695, %v642_v35  ;;  %v1049_v53 = vmul.f32 %v1821_v12, %v1048_v6 }
 0x100   : > { %1832 = vpow2.f32 %v726_v29  ;;  %v1037_v40 = vmul.f32 0.6931472, %v1825_v23  ;;  %v593_v43 = vand.u32 2147483647, %v2790_v30  ;;  %v538_v52 = vsub.f32 %v438_v15, %v488_v51  ;;  %v2841_v51 = vld [vmem:[%s2273_s26 + $0x140] sm:$0xff] }
 0x101   : > { %vm2801_vm0 = vcmp.lt.f32.partialorder %v1050_v34, 0.0004427343  ;;  %1834 = vpow2.f32 %v728_v19  ;;  %v1058_v27 = vmul.f32 %v1823_v21, %v1057_v47  ;;  %v539_v60 = vsub.f32 %v439_v63, %v489_v31  ;;  %v392_v21 = vld [vmem:[%s2281_s30 + $0x120] sm:$0xff]  ;;  %v2845_v47 = vld [vmem:[%s2273_s26 + $0x148] sm:$0xff] }
 0x102   : > { %v1827_v37 = vpop.eup %1826  ;;  %v1043_v54 = vsel %vm2793_vm15, %v1040_v38, %v1037_v40  ;;  %v643_v56 = vsub.f32 0.0, %v593_v43  ;;  %vm2809_vm1 = vcmp.lt.f32.partialorder %v1059_v39, 0.0004427343  ;;  %v594_v36 = vand.u32 2147483647, %v2799_v44 }
 0x103   : > { %v1046_v50 = vmul.f32 0.6931472, %v1827_v37  ;;  %v2807_v45 = vadd.f32 %v1043_v54, %v537_v8  ;;  %v440_v8 = vmax.f32 %v2751_v57, 0.0  ;;  %v490_v16 = vmul.f32 %v390_v4, %v2751_v57 }
 0x104   : > { %v1829_v59 = vpop.eup %1828  ;;  %v730_v61 = vmul.f32 1.442695, %v643_v56  ;;  %v644_v3 = vsub.f32 0.0, %v594_v36  ;;  %v441_v41 = vmax.f32 %v2757_v49, 0.0  ;;  %v595_v48 = vand.u32 2147483647, %v2823_v11 }
 0x105   : > { %v1831_v55 = vpop.eup %1830  ;;  %v1052_v0 = vsel %vm2801_vm0, %v1049_v53, %v1046_v50  ;;  %v1055_v46 = vmul.f32 0.6931472, %v1829_v59  ;;  %1287 = vst [vmem:[%s2353_s24 + $0xf8] sm:$0xff] %v2807_v45  ;;  %v491_v57 = vmul.f32 %v391_v17, %v2757_v49  ;;  %v442_v29 = vmax.f32 %v2767_v2, 0.0  ;;  %v393_v59 = vld [vmem:[%s2281_s30 + $0x128] sm:$0xff] }
 0x106   : > { %v1833_v58 = vpop.eup %1832  ;;  %v2819_v33 = vadd.f32 %v1052_v0, %v538_v52  ;;  %v1062_v9 = vadd.f32 1.0, %v1831_v55  ;;  %v1065_v10 = vmul.f32 -0.5, %v1831_v55  ;;  %v1068_v7 = vand.u32 2147483647, %v1831_v55 }
 0x107   : > { %v1061_v1 = vsel %vm2809_vm1, %v1058_v27, %v1055_v46  ;;  %v1071_v42 = vadd.f32 1.0, %v1833_v58  ;;  %v1074_v12 = vmul.f32 -0.5, %v1833_v58  ;;  %v1835_v13 = vpop.eup %1834  ;;  %v1077_v28 = vand.u32 2147483647, %v1833_v58 }
 0x108   : > { %1288 = vst [vmem:[%s2353_s24 + $0x100] sm:$0xff] %v2819_v33  ;;  %v2829_v15 = vadd.f32 %v1061_v1, %v539_v60  ;;  %1836 = vlog2.f32 %v1062_v9  ;;  %v1066_v20 = vadd.f32 1.0, %v1065_v10  ;;  %v1080_v25 = vadd.f32 1.0, %v1835_v13  ;;  %v394_v9 = vld [vmem:[%s2281_s30 + $0x130] sm:$0xff] }
 0x109   : > { %1838 = vlog2.f32 %v1071_v42  ;;  %v1075_v24 = vadd.f32 1.0, %v1074_v12  ;;  %v1083_v26 = vmul.f32 -0.5, %v1835_v13  ;;  %v492_v6 = vmul.f32 %v392_v21, %v2767_v2 }
 0x10a   : > { %1289 = vst [vmem:[%s2353_s24 + $0x108] sm:$0xff] %v2829_v15  ;;  %1840 = vpow2.f32 %v730_v61  ;;  %v1086_v63 = vand.u32 2147483647, %v1835_v13  ;;  %v732_v32 = vmul.f32 1.442695, %v644_v3  ;;  %v540_v34 = vsub.f32 %v440_v8, %v490_v16  ;;  %v2876_v61 = vld [vmem:[%s2273_s26 + $0x150] sm:$0xff] }
 0x10b   : > { %1842 = vlog2.f32 %v1080_v25  ;;  %v1067_v35 = vmul.f32 %v1831_v55, %v1066_v20  ;;  %v1084_v38 = vadd.f32 1.0, %v1083_v26  ;;  %v645_v31 = vsub.f32 0.0, %v595_v48 }
 0x10c   : > { %vm2847_vm2 = vcmp.lt.f32.partialorder %v1068_v7, 0.0004427343  ;;  %v1076_v5 = vmul.f32 %v1833_v58, %v1075_v24  ;;  %1844 = vpow2.f32 %v732_v32  ;;  %v596_v39 = vand.u32 2147483647, %v2841_v51  ;;  %v2891_v32 = vld [vmem:[%s2273_s26 + $0x158] sm:$0xff] }
 0x10d   : > { %v541_v40 = vsub.f32 %v441_v41, %v491_v57  ;;  %vm2852_vm3 = vcmp.lt.f32.partialorder %v1077_v28, 0.0004427343  ;;  %v734_v43 = vmul.f32 1.442695, %v645_v31  ;;  %v542_v52 = vsub.f32 %v442_v29, %v492_v6  ;;  %v395_v28 = vld [vmem:[%s2281_s30 + $0x138] sm:$0xff] }
 0x10e   : > { %v1837_v23 = vpop.eup %1836  ;;  %vm2856_vm4 = vcmp.lt.f32.partialorder %v1086_v63, 0.0004427343  ;;  %v597_v54 = vand.u32 2147483647, %v2845_v47  ;;  %v1085_v56 = vmul.f32 %v1835_v13, %v1084_v38  ;;  %v646_v60 = vsub.f32 0.0, %v596_v39 }
 0x10f   : > { %v1839_v2 = vpop.eup %1838  ;;  %v1064_v19 = vmul.f32 0.6931472, %v1837_v23  ;;  %1846 = vpow2.f32 %v734_v43  ;;  %v443_v8 = vmax.f32 %v2790_v30, 0.0  ;;  %v493_v1 = vmul.f32 %v393_v59, %v2790_v30  ;;  %v2899_v23 = vld [vmem:[%s2273_s26 + $0x160] sm:$0xff] }
 0x110   : > { %v1073_v37 = vmul.f32 0.6931472, %v1839_v2  ;;  %v1841_v50 = vpop.eup %1840  ;;  %v647_v12 = vsub.f32 0.0, %v597_v54  ;;  %v444_v16 = vmax.f32 %v2799_v44, 0.0  ;;  %v736_v3 = vmul.f32 1.442695, %v646_v60 }
 0x111   : > { %v1070_v27 = vsel %vm2847_vm2, %v1067_v35, %v1064_v19  ;;  %v1843_v62 = vpop.eup %1842  ;;  %v1089_v0 = vadd.f32 1.0, %v1841_v50  ;;  %v1092_v46 = vmul.f32 -0.5, %v1841_v50  ;;  %v1095_v41 = vand.u32 2147483647, %v1841_v50  ;;  %v396_v2 = vld [vmem:[%s2281_s30 + $0x140] sm:$0xff] }
 0x112   : > { %v2864_v36 = vadd.f32 %v1070_v27, %v540_v34  ;;  %v1079_v55 = vsel %vm2852_vm3, %v1076_v5, %v1073_v37  ;;  %v1082_v58 = vmul.f32 0.6931472, %v1843_v62  ;;  %v1845_v10 = vpop.eup %1844  ;;  %v494_v30 = vmul.f32 %v394_v9, %v2799_v44 }
 0x113   : > { %v2868_v4 = vadd.f32 %v1079_v55, %v541_v40  ;;  %1848 = vlog2.f32 %v1089_v0  ;;  %v1093_v42 = vadd.f32 1.0, %v1092_v46  ;;  %v1098_v17 = vadd.f32 1.0, %v1845_v10 }
 0x114   : > { %1290 = vst [vmem:[%s2353_s24 + $0x110] sm:$0xff] %v2864_v36  ;;  %v1088_v13 = vsel %vm2856_vm4, %v1085_v56, %v1082_v58  ;;  %v1101_v21 = vmul.f32 -0.5, %v1845_v10  ;;  %v738_v7 = vmul.f32 1.442695, %v647_v12  ;;  %v598_v24 = vand.u32 2147483647, %v2876_v61 }
 0x115   : > { %1291 = vst [vmem:[%s2353_s24 + $0x118] sm:$0xff] %v2868_v4  ;;  %v2883_v20 = vadd.f32 %v1088_v13, %v542_v52  ;;  %v1847_v48 = vpop.eup %1846  ;;  %1850 = vlog2.f32 %v1098_v17  ;;  %v543_v25 = vsub.f32 %v443_v8, %v493_v1  ;;  %v1094_v26 = vmul.f32 %v1841_v50, %v1093_v42  ;;  %v397_v12 = vld [vmem:[%s2281_s30 + $0x148] sm:$0xff] }
 0x116   : > { %v1102_v57 = vadd.f32 1.0, %v1101_v21  ;;  %v1107_v29 = vadd.f32 1.0, %v1847_v48  ;;  %v1104_v6 = vand.u32 2147483647, %v1845_v10  ;;  %v1110_v63 = vmul.f32 -0.5, %v1847_v48 }
 0x117   : > { %1292 = vst [vmem:[%s2353_s24 + $0x120] sm:$0xff] %v2883_v20  ;;  %1852 = vpow2.f32 %v736_v3  ;;  %v648_v44 = vsub.f32 0.0, %v598_v24  ;;  %vm2893_vm5 = vcmp.lt.f32.partialorder %v1095_v41, 0.0004427343  ;;  %v544_v38 = vsub.f32 %v444_v16, %v494_v30  ;;  %v398_v24 = vld [vmem:[%s2281_s30 + $0x150] sm:$0xff] }
 0x118   : > { %v445_v31 = vmax.f32 %v2823_v11, 0.0  ;;  %1854 = vlog2.f32 %v1107_v29  ;;  %v495_v5 = vmul.f32 %v395_v28, %v2823_v11  ;;  %v1111_v39 = vadd.f32 1.0, %v1110_v63  ;;  %v2943_v28 = vld [vmem:[%s2273_s26 + $0x168] sm:$0xff]  ;;  %v2946_v29 = vld [vmem:[%s2273_s26 + $0x170] sm:$0xff] }
 0x119   : > { %v1849_v34 = vpop.eup %1848  ;;  %1856 = vpow2.f32 %v738_v7  ;;  %v1103_v19 = vmul.f32 %v1845_v10, %v1102_v57  ;;  %v1113_v40 = vand.u32 2147483647, %v1847_v48  ;;  %v740_v53 = vmul.f32 1.442695, %v648_v44 }
 0x11a   : > { %v1091_v49 = vmul.f32 0.6931472, %v1849_v34  ;;  %v599_v43 = vand.u32 2147483647, %v2891_v32  ;;  %v1352_v52 = vadd.f32 %v2779_v22, %v2807_v45  ;;  %vm2908_vm6 = vcmp.lt.f32.partialorder %v1104_v6, 0.0004427343 }
 0x11b   : > { %v1851_v37 = vpop.eup %1850  ;;  %v600_v11 = vand.u32 2147483647, %v2899_v23  ;;  %1858 = vpow2.f32 %v740_v53  ;;  %v545_v60 = vsub.f32 %v445_v31, %v495_v5  ;;  %v1112_v62 = vmul.f32 %v1847_v48, %v1111_v39 }
 0x11c   : > { %v1097_v14 = vsel %vm2893_vm5, %v1094_v26, %v1091_v49  ;;  %v1100_v27 = vmul.f32 0.6931472, %v1851_v37  ;;  %v649_v56 = vsub.f32 0.0, %v599_v43  ;;  %v446_v22 = vmax.f32 %v2841_v51, 0.0 }
 0x11d   : > { %v2913_v50 = vadd.f32 %v1097_v14, %v543_v25  ;;  %v1853_v59 = vpop.eup %1852  ;;  %v496_v45 = vmul.f32 %v396_v2, %v2841_v51  ;;  %vm2921_vm7 = vcmp.lt.f32.partialorder %v1113_v40, 0.0004427343  ;;  %v1329_v10 = vadd.f32 %v2787_v18, %v2819_v33 }
 0x11e   : > { %v1855_v55 = vpop.eup %1854  ;;  %v1106_v0 = vsel %vm2908_vm6, %v1103_v19, %v1100_v27  ;;  %v1116_v58 = vadd.f32 1.0, %v1853_v59  ;;  %v1119_v8 = vmul.f32 -0.5, %v1853_v59  ;;  %v650_v42 = vsub.f32 0.0, %v600_v11 }
 0x11f   : > { %1293 = vst [vmem:[%s2353_s24 + $0x128] sm:$0xff] %v2913_v50  ;;  %v1857_v9 = vpop.eup %1856  ;;  %v2927_v1 = vadd.f32 %v1106_v0, %v544_v38  ;;  %v1109_v51 = vmul.f32 0.6931472, %v1855_v55  ;;  %v742_v17 = vmul.f32 1.442695, %v649_v56  ;;  %v2931_v3 = vadd.f32 %v1352_v52, %v2829_v15  ;;  %v2957_v38 = vld [vmem:[%s2273_s26 + $0x178] sm:$0xff] }
 0x120   : > { %1860 = vlog2.f32 %v1116_v58  ;;  %v1125_v13 = vadd.f32 1.0, %v1857_v9  ;;  %v1128_v16 = vmul.f32 -0.5, %v1857_v9  ;;  %v1120_v33 = vadd.f32 1.0, %v1119_v8  ;;  %v400_v8 = vld [vmem:[%s2281_s30 + $0x160] sm:$0xff] }
 0x121   : > { %1294 = vst [vmem:[%s2353_s24 + $0x130] sm:$0xff] %v2927_v1  ;;  %v1115_v18 = vsel %vm2921_vm7, %v1112_v62, %v1109_v51  ;;  %v1122_v41 = vand.u32 2147483647, %v1853_v59  ;;  %v1859_v30 = vpop.eup %1858  ;;  %v546_v48 = vsub.f32 %v446_v22, %v496_v45  ;;  %v447_v7 = vmax.f32 %v2845_v47, 0.0  ;;  %v399_v22 = vld [vmem:[%s2281_s30 + $0x158] sm:$0xff] }
 0x122   : > { %v2937_v21 = vadd.f32 %v1115_v18, %v545_v60  ;;  %1862 = vlog2.f32 %v1125_v13  ;;  %v497_v15 = vmul.f32 %v397_v12, %v2845_v47  ;;  %v1129_v25 = vadd.f32 1.0, %v1128_v16 }
 0x123   : > { %v1134_v26 = vadd.f32 1.0, %v1859_v30  ;;  %v1137_v57 = vmul.f32 -0.5, %v1859_v30  ;;  %v1131_v6 = vand.u32 2147483647, %v1857_v9  ;;  %v448_v63 = vmax.f32 %v2876_v61, 0.0 }
 0x124   : > { %1295 = vst [vmem:[%s2353_s24 + $0x138] sm:$0xff] %v2937_v21  ;;  %1864 = vpow2.f32 %v742_v17  ;;  %v744_v44 = vmul.f32 1.442695, %v650_v42  ;;  %v1121_v34 = vmul.f32 %v1853_v59, %v1120_v33  ;;  %vm2951_vm8 = vcmp.lt.f32.partialorder %v1122_v41, 0.0004427343 }
 0x125   : > { %v498_v47 = vmul.f32 %v398_v24, %v2876_v61  ;;  %1866 = vlog2.f32 %v1134_v26  ;;  %v1138_v49 = vadd.f32 1.0, %v1137_v57  ;;  %v1140_v5 = vand.u32 2147483647, %v1859_v30 }
 0x126   : > { %v1861_v31 = vpop.eup %1860  ;;  %1868 = vpow2.f32 %v744_v44  ;;  %v601_v39 = vand.u32 2147483647, %v2943_v28  ;;  %v547_v19 = vsub.f32 %v447_v7, %v497_v15  ;;  %v1130_v40 = vmul.f32 %v1857_v9, %v1129_v25  ;;  %v401_v44 = vld [vmem:[%s2281_s30 + $0x168] sm:$0xff] }
 0x127   : > { %v1118_v2 = vmul.f32 0.6931472, %v1861_v31  ;;  %v602_v53 = vand.u32 2147483647, %v2946_v29  ;;  %v1330_v37 = vadd.f32 %v1329_v10, %v2864_v36  ;;  %vm2962_vm9 = vcmp.lt.f32.partialorder %v1131_v6, 0.0004427343 }
 0x128   : > { %v1863_v43 = vpop.eup %1862  ;;  %v651_v52 = vsub.f32 0.0, %v601_v39  ;;  %v603_v14 = vand.u32 2147483647, %v2957_v38  ;;  %v548_v27 = vsub.f32 %v448_v63, %v498_v47  ;;  %v449_v56 = vmax.f32 %v2891_v32, 0.0  ;;  %v3000_v6 = vld [vmem:[%s2273_s26 + $0x188] sm:$0xff] }
 0x129   : > { %v1124_v54 = vsel %vm2951_vm8, %v1121_v34, %v1118_v2  ;;  %v1127_v11 = vmul.f32 0.6931472, %v1863_v43  ;;  %v1139_v36 = vmul.f32 %v1859_v30, %v1138_v49  ;;  %vm2972_vm10 = vcmp.lt.f32.partialorder %v1140_v5, 0.0004427343 }
 0x12a   : > { %v1865_v59 = vpop.eup %1864  ;;  %v2970_v60 = vadd.f32 %v1124_v54, %v546_v48  ;;  %v746_v45 = vmul.f32 1.442695, %v651_v52  ;;  %v652_v9 = vsub.f32 0.0, %v602_v53  ;;  %v653_v12 = vsub.f32 0.0, %v603_v14  ;;  %v2992_v48 = vld [vmem:[%s2273_s26 + $0x180] sm:$0xff] }
 0x12b   : > { %v1867_v55 = vpop.eup %1866  ;;  %v1133_v0 = vsel %vm2962_vm9, %v1130_v40, %v1127_v11  ;;  %v1143_v46 = vadd.f32 1.0, %v1865_v59  ;;  %v1146_v58 = vmul.f32 -0.5, %v1865_v59  ;;  %v499_v13 = vmul.f32 %v399_v22, %v2891_v32 }
 0x12c   : > { %v1869_v10 = vpop.eup %1868  ;;  %1296 = vst [vmem:[%s2353_s24 + $0x140] sm:$0xff] %v2970_v60  ;;  %v2982_v51 = vadd.f32 %v1133_v0, %v547_v19  ;;  %v1136_v42 = vmul.f32 0.6931472, %v1867_v55  ;;  %1870 = vpow2.f32 %v746_v45  ;;  %v450_v16 = vmax.f32 %v2899_v23, 0.0 }
 0x12d   : > { %1872 = vlog2.f32 %v1143_v46  ;;  %v1152_v17 = vadd.f32 1.0, %v1869_v10  ;;  %v1147_v33 = vadd.f32 1.0, %v1146_v58  ;;  %v500_v41 = vmul.f32 %v400_v8, %v2899_v23 }
 0x12e   : > { %1297 = vst [vmem:[%s2353_s24 + $0x148] sm:$0xff] %v2982_v51  ;;  %v1142_v18 = vsel %vm2972_vm10, %v1139_v36, %v1136_v42  ;;  %v1155_v30 = vmul.f32 -0.5, %v1869_v10  ;;  %v1149_v32 = vand.u32 2147483647, %v1865_v59  ;;  %v748_v24 = vmul.f32 1.442695, %v652_v9 }
 0x12f   : > { %v2994_v7 = vadd.f32 %v1142_v18, %v548_v27  ;;  %1874 = vlog2.f32 %v1152_v17  ;;  %v1354_v15 = vadd.f32 %v2931_v3, %v2868_v4  ;;  %v1331_v25 = vadd.f32 %v1330_v37, %v2883_v20  ;;  %v402_v36 = vld [vmem:[%s2281_s30 + $0x170] sm:$0xff] }
 0x130   : > { %v1156_v26 = vadd.f32 1.0, %v1155_v30  ;;  %v750_v57 = vmul.f32 1.442695, %v653_v12  ;;  %v549_v23 = vsub.f32 %v449_v56, %v499_v13  ;;  %v1158_v63 = vand.u32 2147483647, %v1869_v10  ;;  %v403_v12 = vld [vmem:[%s2281_s30 + $0x178] sm:$0xff] }
 0x131   : > { %1298 = vst [vmem:[%s2353_s24 + $0x150] sm:$0xff] %v2994_v7  ;;  %1876 = vpow2.f32 %v748_v24  ;;  %v604_v34 = vand.u32 2147483647, %v2992_v48  ;;  %v1148_v47 = vmul.f32 %v1865_v59, %v1147_v33  ;;  %v550_v31 = vsub.f32 %v450_v16, %v500_v41 }
 0x132   : > { %v1871_v35 = vpop.eup %1870  ;;  %v451_v49 = vmax.f32 %v2943_v28, 0.0  ;;  %1878 = vpow2.f32 %v750_v57  ;;  %vm3007_vm11 = vcmp.lt.f32.partialorder %v1149_v32, 0.0004427343  ;;  %v1157_v19 = vmul.f32 %v1869_v10, %v1156_v26 }
 0x133   : > { %v1873_v4 = vpop.eup %1872  ;;  %v1161_v3 = vadd.f32 1.0, %v1871_v35  ;;  %v1164_v5 = vmul.f32 -0.5, %v1871_v35  ;;  %v654_v39 = vsub.f32 0.0, %v604_v34  ;;  %v501_v40 = vmul.f32 %v401_v44, %v2943_v28 }
 0x134   : > { %v1145_v2 = vmul.f32 0.6931472, %v1873_v4  ;;  %v605_v53 = vand.u32 2147483647, %v3000_v6  ;;  %v1355_v37 = vadd.f32 %v1354_v15, %v2913_v50  ;;  %vm3014_vm12 = vcmp.lt.f32.partialorder %v1158_v63, 0.0004427343 }
 0x135   : > { %v1875_v43 = vpop.eup %1874  ;;  %1880 = vlog2.f32 %v1161_v3  ;;  %v752_v52 = vmul.f32 1.442695, %v654_v39  ;;  %v1332_v14 = vadd.f32 %v1331_v25, %v2927_v1  ;;  %v1165_v27 = vadd.f32 1.0, %v1164_v5 }
 0x136   : > { %v1151_v54 = vsel %vm3007_vm11, %v1148_v47, %v1145_v2  ;;  %v1154_v11 = vmul.f32 0.6931472, %v1875_v43  ;;  %v1167_v59 = vand.u32 2147483647, %v1871_v35  ;;  %v655_v50 = vsub.f32 0.0, %v605_v53 }
 0x137   : > { %v1877_v28 = vpop.eup %1876  ;;  %v3021_v56 = vadd.f32 %v1151_v54, %v549_v23  ;;  %1882 = vpow2.f32 %v752_v52  ;;  %v551_v45 = vsub.f32 %v451_v49, %v501_v40  ;;  %v452_v46 = vmax.f32 %v2946_v29, 0.0 }
 0x138   : > { %v1879_v62 = vpop.eup %1878  ;;  %v1160_v22 = vsel %vm3014_vm12, %v1157_v19, %v1154_v11  ;;  %v1170_v1 = vadd.f32 1.0, %v1877_v28  ;;  %v1173_v55 = vmul.f32 -0.5, %v1877_v28  ;;  %v1333_v9 = vadd.f32 %v1332_v14, %v2970_v60  ;;  %v405_v11 = vld [vmem:[%s2281_s30 + $0x188] sm:$0xff] }
 0x139   : > { %1299 = vst [vmem:[%s2353_s24 + $0x158] sm:$0xff] %v3021_v56  ;;  %v1250_v0 = vadd.f32 %v1160_v22, %v550_v31  ;;  %v1179_v58 = vadd.f32 1.0, %v1879_v62  ;;  %v1182_v8 = vmul.f32 -0.5, %v1879_v62  ;;  %v1166_v10 = vmul.f32 %v1871_v35, %v1165_v27  ;;  %v404_v35 = vld [vmem:[%s2281_s30 + $0x180] sm:$0xff] }
 0x13a   : > { %v502_v42 = vmul.f32 %v402_v36, %v2946_v29  ;;  %1884 = vlog2.f32 %v1170_v1  ;;  %vm3033_vm13 = vcmp.lt.f32.partialorder %v1167_v59, 0.0004427343  ;;  %v1174_v17 = vadd.f32 1.0, %v1173_v55 }
 0x13b   : > { %v1881_v13 = vpop.eup %1880  ;;  %1300 = vst [vmem:[%s2353_s24 + $0x160] sm:$0xff] %v1250_v0  ;;  %1886 = vlog2.f32 %v1179_v58  ;;  %v754_v18 = vmul.f32 1.442695, %v655_v50  ;;  %v1176_v41 = vand.u32 2147483647, %v1877_v28  ;;  %v1183_v30 = vadd.f32 1.0, %v1182_v8 }
 0x13c   : > { %v1163_v33 = vmul.f32 0.6931472, %v1881_v13  ;;  %v453_v60 = vmax.f32 %v2957_v38, 0.0  ;;  %v503_v29 = vmul.f32 %v403_v12, %v2957_v38  ;;  %v1185_v24 = vand.u32 2147483647, %v1879_v62 }
 0x13d   : > { %v1883_v32 = vpop.eup %1882  ;;  %1888 = vpow2.f32 %v754_v18  ;;  %v1356_v15 = vadd.f32 %v1355_v37, %v2937_v21  ;;  %v1334_v23 = vadd.f32 %v1333_v9, %v2994_v7  ;;  %v552_v44 = vsub.f32 %v452_v46, %v502_v42 }
 0x13e   : > { %v1169_v25 = vsel %vm3033_vm13, %v1166_v10, %v1163_v33  ;;  %v1188_v26 = vadd.f32 1.0, %v1883_v32  ;;  %v1191_v57 = vmul.f32 -0.5, %v1883_v32  ;;  %v1175_v34 = vmul.f32 %v1877_v28, %v1174_v17 }
 0x13f   : > { %v1251_v63 = vadd.f32 %v1169_v25, %v551_v45  ;;  %vm3044_vm14 = vcmp.lt.f32.partialorder %v1176_v41, 0.0004427343  ;;  %v1184_v38 = vmul.f32 %v1879_v62, %v1183_v30  ;;  %v454_v49 = vmax.f32 %v2992_v48, 0.0 }
 0x140   : > { %v1885_v47 = vpop.eup %1884  ;;  %1890 = vlog2.f32 %v1188_v26  ;;  %v553_v20 = vsub.f32 %v453_v60, %v503_v29  ;;  %vm1186_vm15 = vcmp.lt.f32.partialorder %v1185_v24, 0.0004427343  ;;  %v1192_v7 = vadd.f32 1.0, %v1191_v57 }
 0x141   : > { %v1887_v21 = vpop.eup %1886  ;;  %1301 = vst [vmem:[%s2353_s24 + $0x168] sm:$0xff] %v1251_v63  ;;  %v1172_v4 = vmul.f32 0.6931472, %v1885_v47  ;;  %v1357_v3 = vadd.f32 %v1356_v15, %v2982_v51  ;;  %v504_v39 = vmul.f32 %v404_v35, %v2992_v48  ;;  %v1194_v2 = vand.u32 2147483647, %v1883_v32 }
 0x142   : > { %v1181_v5 = vmul.f32 0.6931472, %v1887_v21  ;;  %v1335_v40 = vadd.f32 %v1334_v23, %v1250_v0  ;;  %v1193_v54 = vmul.f32 %v1883_v32, %v1192_v7  ;;  %v455_v50 = vmax.f32 %v3000_v6, 0.0 }
 0x143   : > { %v1889_v19 = vpop.eup %1888  ;;  %v1178_v53 = vsel %vm3044_vm14, %v1175_v34, %v1172_v4  ;;  %v1358_v51 = vadd.f32 %v1357_v3, %v3021_v56  ;;  %v554_v48 = vsub.f32 %v454_v49, %v504_v39  ;;  %vm1195_vm0 = vcmp.lt.f32.partialorder %v1194_v2, 0.0004427343 }
 0x144   : > { %v1252_v43 = vadd.f32 %v1178_v53, %v552_v44  ;;  %v1187_v37 = vsel %vm1186_vm15, %v1184_v38, %v1181_v5  ;;  %v1197_v61 = vadd.f32 1.0, %v1889_v19  ;;  %v1200_v52 = vmul.f32 -0.5, %v1889_v19 }
 0x145   : > { %v1253_v14 = vadd.f32 %v1187_v37, %v553_v20  ;;  %v505_v62 = vmul.f32 %v405_v11, %v3000_v6  ;;  %v1203_v22 = vand.u32 2147483647, %v1889_v19  ;;  %v1359_v1 = vadd.f32 %v1358_v51, %v1251_v63 }
 0x146   : > { %v1891_v27 = vpop.eup %1890  ;;  %1302 = vst [vmem:[%s2353_s24 + $0x170] sm:$0xff] %v1252_v43  ;;  %1892 = vlog2.f32 %v1197_v61  ;;  %v1201_v59 = vadd.f32 1.0, %v1200_v52  ;;  %v1336_v36 = vadd.f32 %v1335_v40, %v1252_v43  ;;  %v1391_v15 = vlaneseq }
 0x147   : > { %1303 = vst [vmem:[%s2353_s24 + $0x178] sm:$0xff] %v1253_v14  ;;  %v1190_v28 = vmul.f32 0.6931472, %v1891_v27  ;;  %v555_v58 = vsub.f32 %v455_v50, %v505_v62  ;;  %vm1204_vm1 = vcmp.lt.f32.partialorder %v1203_v22, 0.0004427343  ;;  %v1360_v9 = vadd.f32 %v1359_v1, %v1253_v14 }
 0x148   : > { %v1202_v0 = vmul.f32 %v1889_v19, %v1201_v59  ;;  %vm1388_vm2 = vcmask 1040384   ;;  %vm1393_vm3 = vcmp.lt.s32.totalorder %v1391_v15, 256 }
 0x149   : > { %v1196_v45 = vsel %vm1195_vm0, %v1193_v54, %v1190_v28 }
 0x14a   : > { %v1254_v55 = vadd.f32 %v1196_v45, %v554_v48 }
 0x14c   : > { %v1893_v56 = vpop.eup %1892  ;;  %1304 = vst [vmem:[%s2353_s24 + $0x180] sm:$0xff] %v1254_v55  ;;  %v1337_v46 = vadd.f32 %v1336_v36, %v1254_v55 }
 0x14d   : > { %v1199_v8 = vmul.f32 0.6931472, %v1893_v56 }
 0x14e   : > { %v1371_v10 = vrot.slane %v1337_v46, 4 }
 0x14f   : > { %v1205_v42 = vsel %vm1204_vm1, %v1202_v0, %v1199_v8 }
 0x150   : > { %v1372_v12 = vadd.f32 %v1371_v10, %v1337_v46  ;;  %v1255_v13 = vadd.f32 %v1205_v42, %v555_v58 }
 0x152   : > { %v1373_v16 = vrot.slane %v1372_v12, 2  ;;  %1305 = vst [vmem:[%s2353_s24 + $0x188] sm:$0xff] %v1255_v13  ;;  %v1361_v6 = vadd.f32 %v1360_v9, %v1255_v13 }
 0x154   : > { %v1374_v17 = vadd.f32 %v1373_v16, %v1372_v12  ;;  %v1377_v18 = vrot.slane %v1361_v6, 4 }
 0x156   : > { %v1378_v33 = vadd.f32 %v1377_v18, %v1361_v6  ;;  %v1375_v30 = vrot.slane %v1374_v17, 1 }
 0x158   : > { %v1379_v41 = vrot.slane %v1378_v33, 2  ;;  %v1376_v60 = vadd.f32 %v1375_v30, %v1374_v17 }
 0x15a   : > { %v1380_v32 = vadd.f32 %v1379_v41, %v1378_v33  ;;  %v1383_v25 = vmul.f32 0.005, %v1376_v60 }
 0x15c   : > { %v1381_v29 = vrot.slane %v1380_v32, 1 }
 0x15e   : > { %v1382_v24 = vadd.f32 %v1381_v29, %v1380_v32 }
 0x160   : > { %v1384_v26 = vmul.f32 0.005, %v1382_v24 }
 0x161   : > { %1408 = sbr.rel (!%p2195_p9) target bundleno = 397 (0x18d), region = 48 }
 0x162   : > { %v1387_v57 = vrot.slane %v1384_v26, 7 }
 0x164   : > { %v1389_v23 = vsel %vm1388_vm2, %v1383_v25, %v1387_v57 }
 0x165   : > { %1395 = vst.msk [vmem:[%s3063_s9] sm:$0x3] %vm1393_vm3, %v1389_v23 }
 0x166   : > { %s3304_s6 = smov (!%p1412_p8, %s1411_s6), 2 }
 0x167   : > { %s1414_s7 = smul.u32 200, %s3304_s6 }
 0x169   : > { %s1415_s5 = ssub.s32 400, %s1414_s7 }
 0x16a   : > { %s1416_s11 = sshll.u32 %s1415_s5, 4 }
 0x16b   : > { %1417 = vsyncadd %s3180_s19, %s1416_s11  ;;  %p3076_p4 = scmp.ne.s32.totalorder %s1414_s7, 0  ;;  %s1624_s4 = sshll.u32 %s2104_s15, 4 }
 0x16c   : > { %s1422_s22 = scalar_lea.hbm %s3177_s2, %s1624_s4  ;;  %s1615_s26 = sshll.u32 %s3304_s6, 3 }
 0x16d   : > { %s1425_s10 = sshll.u32 %s2353_s24, 4  ;;  %s1427_s30 = sshll.u32 %s1422_s22, 4  ;;  %s3086_s10 = int_to_ptr.vmem [resolvable:$true] %s1425_s10  ;;  %s3088_s30 = int_to_ptr.hbm [resolvable:$true] %s1427_s30 }
 0x16e   : > { %s3091_s18 = smul.u32 3200, %s3304_s6  ;;  %s1972_s21 = sshra.s32 %s3086_s10, 4  ;;  %s1973_s21 = int_to_ptr.vmem [resolvable:$true] %s1972_s21 }
 0x16f   : > { %s2120_s24 = smov [#allocation8]  }
 0x170   : > { %s1974_s7 = sshrl.u32 %s3091_s18, 4  ;;  %s1983_s23 = scalar_lea.vmem %s2120_s24, 800 }
 0x171   : > { %s2010_s5 = sshll.u32 %s1974_s7, 4  ;;  %s1977_s11 = sadd.s32 1, %s1974_s7 }
 0x172   : > { %p1976_p13 = scmp.ne.s32.totalorder %s2010_s5, %s3091_s18 }
 0x174   : > { %s3306_s11 = smov (!%p1976_p13, %s1977_s11), %s1974_s7 }
 0x175   : > { %s1979_s4 = scalar_lea.vmem %s1973_s21, %s3306_s11 }
 0x176   : > { %p1980_p0 = scmp.ne.s32.totalorder %s1973_s21, %s1979_s4  ;;  %p1985_p3 = scmp.lt.s32.totalorder %s1983_s23, %s1979_s4 }
 0x178   : > { %p1981_p1 = pnand %p1980_p0, %p3076_p4 }
 0x17a   : > { %p1982_p2 = pneg %p1981_p1 }
 0x17c   : > { %p1987_p5 = pnand %p1985_p3, %p1982_p2 }
 0x17e   : > { %1990 = shalt.err (!%p1987_p5)
}
 0x17f   : > { %s1991_s28 = sshra.s32 %s3088_s30, 4  ;;  %s2002_s21 = scalar_lea.hbm %s3177_s2, 600  ;;  %s1992_s28 = int_to_ptr.hbm [resolvable:$true] %s1991_s28 }
 0x180   : > { %s1998_s22 = scalar_lea.hbm %s1992_s28, %s3306_s11  ;;  %p2003_p8 = scmp.lt.s32.totalorder %s1992_s28, %s3177_s2 }
 0x181   : > { %p1999_p6 = scmp.ne.s32.totalorder %s1992_s28, %s1998_s22  ;;  %p2004_p13 = scmp.lt.s32.totalorder %s2002_s21, %s1998_s22 }
 0x183   : > { %p2000_p7 = pnand %p1999_p6, %p3076_p4  ;;  %p2005_p0 = por %p2004_p13, %p2003_p8 }
 0x185   : > { %p2001_p10 = pneg %p2000_p7 }
 0x187   : > { %p2006_p1 = pnand %p2005_p0, %p2001_p10 }
 0x189   : > { %2009 = shalt.err (!%p2006_p1)
}
 0x18a   : > { %s2121_s4 = smov 256   ;;  %s2122_s11 = smov 384  }
 0x18b   : > { %s3284_s24 = scalar_lea.sflag [#allocation5], %s2266_s29 }
 0x18c   : > { %1433 = dma.vmem_to_hbm [thread:$0]  (%p3076_p4), %s3086_s10, %s3091_s18, %s3088_s30, %s3284_s24, %s2121_s4, %s2122_s11, %s1615_s26  }
 0x18d PF: > { %1436 = sbr.rel (!%p2195_p9) target bundleno = 431 (0x1af), region = 52  ;;  %s1618_s19 = sshll.u32 (%p2195_p9), %s2104_s15, 1 }
 0x18e   : > { %s1438_s20 = ssub.s32 (%p2195_p9), 3, %s1618_s19  ;;  %s3285_s22 = scalar_lea.sflag (%p2195_p9), [#allocation10], %s2266_s29 }
 0x18f   : > { %p1439_p2 = scmp.lt.s32.totalorder (%p2195_p9), %s1438_s20, 2 }
 0x192   : > { %s3308_s20 = smov (!%p1439_p2, %s1438_s20), 2 }
 0x193   : > { %s1441_s23 = ssub.s32 2, %s3308_s20 }
 0x194   : > { %s1442_s28 = sshll.u32 %s1441_s23, 4 }
 0x195   : > { %1443 = vsyncadd %s3285_s22, %s1442_s28  ;;  %p1619_p4 = scmp.ne.s32.totalorder %s3308_s20, 0  ;;  %s1445_s8 = scalar_lea.hbm %s3178_s3, %s1618_s19 }
 0x196   : > { %s1446_s15 = sshll.u32 %s3308_s20, 4  ;;  %s1447_s26 = sshll.u32 %s3063_s9, 4  ;;  %s3130_s26 = int_to_ptr.vmem [resolvable:$true] %s1447_s26 }
 0x197   : > { %s1449_s10 = sshll.u32 %s1445_s8, 4  ;;  %s2011_s30 = sshra.s32 %s3130_s26, 4  ;;  %s1450_s10 = int_to_ptr.hbm [resolvable:$true] %s1449_s10  ;;  %s2012_s30 = int_to_ptr.vmem [resolvable:$true] %s2011_s30 }
 0x198   : > { %s2013_s18 = sshrl.u32 %s1446_s15, 4  ;;  %s2123_s5 = smov [#allocation9]  }
 0x199   : > { %s2018_s7 = scalar_lea.vmem %s2012_s30, %s2013_s18  ;;  %s2022_s21 = scalar_lea.vmem %s2123_s5, 4 }
 0x19a   : > { %p2019_p9 = scmp.ne.s32.totalorder %s2012_s30, %s2018_s7  ;;  %p2024_p6 = scmp.lt.s32.totalorder %s2022_s21, %s2018_s7 }
 0x19c   : > { %p2020_p3 = pnand %p2019_p9, %p1619_p4 }
 0x19e   : > { %p2021_p5 = pneg %p2020_p3 }
 0x1a0   : > { %p2026_p7 = pnand %p2024_p6, %p2021_p5 }
 0x1a2   : > { %2029 = shalt.err (!%p2026_p7)
}
 0x1a3   : > { %s2030_s9 = sshra.s32 %s1450_s10, 4  ;;  %s2041_s19 = scalar_lea.hbm %s3178_s3, 3  ;;  %s2031_s9 = int_to_ptr.hbm [resolvable:$true] %s2030_s9 }
 0x1a4   : > { %s2037_s4 = scalar_lea.hbm %s2031_s9, %s2013_s18  ;;  %p2042_p0 = scmp.lt.s32.totalorder %s2031_s9, %s3178_s3 }
 0x1a5   : > { %p2038_p10 = scmp.ne.s32.totalorder %s2031_s9, %s2037_s4  ;;  %p2043_p1 = scmp.lt.s32.totalorder %s2041_s19, %s2037_s4 }
 0x1a7   : > { %p2039_p8 = pnand %p2038_p10, %p1619_p4  ;;  %p2044_p2 = por %p2043_p1, %p2042_p0 }
 0x1a9   : > { %p2040_p13 = pneg %p2039_p8 }
 0x1ab   : > { %p2045_p9 = pnand %p2044_p2, %p2040_p13 }
 0x1ad   : > { %2048 = shalt.err (!%p2045_p9)
}
 0x1ae   : > { %1452 = dma.vmem_to_hbm [thread:$0]  (%p1619_p4), %s3130_s26, %s1446_s15, %s1450_s10, %s3285_s22  }
 0x1af PF: > { %s1461_s25 = sand.u32 1, %s2092_s12   ;;  %p1633_p3 = pnand %p1596_p12, %p2202_p11 }
 0x1b0   : > { %s1462_s6 = scalar_lea.sflag [#allocation5], %s1461_s25 }
 0x1b1   : > { %p1634_p5 = pneg %p1633_p3 }
 0x1b3   : > { %2083 = dma.done.wait (%p1634_p5), %s1462_s6, 6400  }
 0x1b4   : > { %2085 = vsyncadd (%p1634_p5), %s1462_s6, 4294960896  ;;  %s1472_s8 = scalar_lea.sflag [#allocation10], %s1461_s25 }
 0x1b5   : > { %2087 = dma.done.wait (%p1634_p5), %s1472_s8, 32  }
 0x1b6   : > { %2089 = vsyncadd (%p1634_p5), %s1472_s8, 4294967264  ;;  %s26_s17 = sadd.s32 1, %s2112_s17   ;;  %s3286_s29 = sld [smem:[#allocation16_spill]] }
 0x1b7   : > { %p23_p6 = scmp.ge.s32.totalorder %s26_s17, 4   ;;  %s3287_s20 = sld [smem:[#allocation15_spill]] }
 0x1b8   : > { %s3288_s12 = smov %s2096_s13  ;;  %s3289_s13 = smov %s2100_s14 }
 0x1b9   : > { %s3291_s15 = smov %s2108_s16  ;;  %25 = sbr.rel (!%p23_p6) target bundleno = 10 (0xa), region = 111 }
 0x1bc   : > { %s3290_s14 = smov %s3286_s29 }
 0x1bd   : > { %s3292_s16 = smov %s3287_s20 }
 0x1be   :  { %1478 = vsyncpa [#allocation4], 1 }
 0x1bf   :  { %1480 = vsyncpa [#allocation4 + $0x1], 1 }
 0x1c0   :  { %1481 = vsyncpa [#allocation7], 1 }
 0x1c1   :  { %1483 = vsyncpa [#allocation7 + $0x1], 1 }
 0x1c2   :  { %1484 = vsyncpa [#allocation5], 1 }
 0x1c3   :  { %1486 = vsyncpa [#allocation5 + $0x1], 1 }
 0x1c4   :  { %1487 = vsyncpa [#allocation10], 1 }
 0x1c5   :  { %1489 = vsyncpa [#allocation10 + $0x1], 1 }

</bundles_post_ra>
